<compile_context>
chip_gen: v5e
topology: v5e:2x2
jax: 0.10.0
libtpu: 0.0.40
codegen_flags: <defaults>
</compile_context>

<pallas_src>
import functools

import jax
import jax.numpy as jnp
from jax.experimental import pallas as pl
from jax.experimental.pallas import tpu as pltpu

EPS = 1e-5        # nn.BatchNorm1d default eps
LANE = 128
SUBLANE_BF16 = 16  # bf16 packs two rows per sublane


def _round_up(x, m):
    return (x + m - 1) // m * m


# ---------------------------------------------------------------------------
# Fused kernel: entire MLP for one batch tile.
# Operand order: x_ref, then per layer [w, b], then the output ref.
# ---------------------------------------------------------------------------
def _mlp_fused_kernel(x_ref, *refs, relu_flags):
    o_ref = refs[-1]
    params = refs[:-1]
    n_layers = len(relu_flags)

    h = x_ref[...]                                    # bf16 (TB, Fp)
    for li, relu in enumerate(relu_flags):
        w_ref = params[2 * li]
        b_ref = params[2 * li + 1]
        # bf16 x bf16 -> fp32 accumulation on the MXU.
        y = jnp.dot(h, w_ref[...], preferred_element_type=jnp.float32)
        y = y + b_ref[...]                            # fp32 bias
        if relu:
            y = jnp.maximum(y, 0.0)
        if li + 1 < n_layers:
            h = y.astype(jnp.bfloat16)                # input of next matmul
        else:
            o_ref[...] = y.astype(o_ref.dtype)


# ---------------------------------------------------------------------------
# Host-side: fold every BatchNorm affine into the NEXT Linear.
# Returns [(W, b, relu)] with W stored (in, out); kernel does dot+bias(+ReLU).
# ---------------------------------------------------------------------------
def _fold_layers(params):
    blocks = list(params["hidden"]) + list(params["intermediate"])

    layers = []
    scale, shift = params["norm"]           # affine pending before next Linear
    for (w, b, s, t) in blocks:
        b = b + shift @ w                   # uses the *original* W
        w = scale[:, None] * w
        layers.append((w, b, True))
        scale, shift = s, t                 # this block's BN feeds the next Linear
    w_out, b_out = params["output_1"]
    b_out = b_out + shift @ w_out
    w_out = scale[:, None] * w_out
    layers.append((w_out, b_out, False))
    return layers


# ---------------------------------------------------------------------------
# Wrapper: pad to lane-dense shapes, build specs, single pallas_call over
# batch tiles with VMEM-resident weights.
# ---------------------------------------------------------------------------
def mlp_multitask_forward(params, x, *, batch_tile=512):
    B, F = x.shape
    out_dim = params["output_1"][0].shape[1]

    layers = _fold_layers(params)

    # Lane-dense padding of input features and head output.
    Fp = _round_up(F, LANE)
    Np = _round_up(out_dim, LANE)
    padded = []
    n_layers = len(layers)
    for li, (w, b, relu) in enumerate(layers):
        if li == 0:
            w = jnp.pad(w, ((0, Fp - F), (0, 0)))     # zero rows hit zero cols
        if li == n_layers - 1:
            w = jnp.pad(w, ((0, 0), (0, Np - out_dim)))
            b = jnp.pad(b, ((0, Np - out_dim),))
        padded.append((w, b, relu))
    layers = padded

    # Batch tiling: sublane-aligned (bf16), capped at batch_tile, and split
    # into >= 2 tiles for large-enough batches so both v7x TCs get work.
    half = _round_up(max(-(-B // 2), 1), SUBLANE_BF16)
    TB = max(SUBLANE_BF16, min(batch_tile, half))
    Bp = _round_up(B, TB)
    xp = jnp.pad(x, ((0, Bp - B), (0, Fp - F))).astype(jnp.bfloat16)

    # Flatten operands + BlockSpecs. Weights/biases use constant index maps,
    # so they stay resident in VMEM across batch-tile grid steps.
    flat_args = [xp]
    in_specs = [pl.BlockSpec((TB, Fp), lambda i: (i, 0))]
    relu_flags = []
    for (w, b, relu) in layers:
        K, N = w.shape
        flat_args.append(w.astype(jnp.bfloat16))
        in_specs.append(pl.BlockSpec((K, N), lambda i: (0, 0)))
        flat_args.append(b.reshape(1, N).astype(jnp.float32))
        in_specs.append(pl.BlockSpec((1, N), lambda i: (0, 0)))
        relu_flags.append(relu)

    # VMEM budget: double-buffered weights/biases + I/O tiles + fp32
    # activation scratch, with headroom; clamped to v7x's 64 MiB physical.
    weight_bytes = sum(w.size * 2 + w.shape[1] * 4 for (w, _, _) in layers)
    max_n = max(w.shape[1] for (w, _, _) in layers)
    act_bytes = TB * max(Fp, max_n) * 4
    need = 2 * weight_bytes + 2 * (TB * Fp * 2 + TB * Np * 4) + 6 * act_bytes
    vmem_limit = int(min(64 * 1024 * 1024, max(32 * 1024 * 1024, 2 * need)))

    kernel = functools.partial(_mlp_fused_kernel, relu_flags=tuple(relu_flags))

    out = pl.pallas_call(
        kernel,
        out_shape=jax.ShapeDtypeStruct((Bp, Np), jnp.float32),
        grid=(Bp // TB,),
        in_specs=in_specs,
        out_specs=pl.BlockSpec((TB, Np), lambda i: (i, 0)),
        compiler_params=pltpu.CompilerParams(
            dimension_semantics=("parallel",),
            vmem_limit_bytes=vmem_limit,
        ),
    )(*flat_args)

    return out[:B, :out_dim]


# ---------------------------------------------------------------------------
# Pure-JAX fp32 reference with the ORIGINAL (unfolded) op order:
# BN(x) -> [Linear, ReLU, BN]* -> head.  Guards both the fold and the kernel.
# ---------------------------------------------------------------------------
def mlp_multitask_reference(params, x):
    in_scale, in_shift = params["norm"]
    h = x * in_scale + in_shift
    for (w, b, s, t) in list(params["hidden"]) + list(params["intermediate"]):
        h = jnp.maximum(h @ w + b, 0.0)
        h = h * s + t
    w_out, b_out = params["output_1"]
    return h @ w_out + b_out


# ---------------------------------------------------------------------------
# Parameter construction (deterministic, synthetic)
# ---------------------------------------------------------------------------
def _bn_scale_shift(key, dim):
    """Synthetic BatchNorm params folded into eval-mode (scale, shift)."""
    k1, k2, k3, k4 = jax.random.split(key, 4)
    gamma = 1.0 + 0.1 * jax.random.normal(k1, (dim,), jnp.float32)
    beta = 0.1 * jax.random.normal(k2, (dim,), jnp.float32)
    running_mean = 0.1 * jax.random.normal(k3, (dim,), jnp.float32)
    running_var = jnp.abs(jax.random.normal(k4, (dim,), jnp.float32)) + 0.5
    scale = gamma / jnp.sqrt(running_var + EPS)
    shift = beta - running_mean * scale
    return scale, shift


def _linear_params(key, in_dim, out_dim):
    """PyTorch-style uniform(-1/sqrt(in), 1/sqrt(in)) init, stored (in, out)."""
    kw, kb = jax.random.split(key)
    bound = 1.0 / jnp.sqrt(jnp.float32(in_dim))
    w = jax.random.uniform(kw, (in_dim, out_dim), jnp.float32, -bound, bound)
    b = jax.random.uniform(kb, (out_dim,), jnp.float32, -bound, bound)
    return w, b


def init_mlp_multitask_params(key, input_shape, hidden_size,
                              intermediate_layer, output_shape):
    keys = jax.random.split(key, 2 * (hidden_size + intermediate_layer) + 2)
    ki = iter(range(len(keys)))

    params = {}
    params["norm"] = _bn_scale_shift(keys[next(ki)], input_shape)

    in_dim = input_shape
    hidden = []
    for _ in range(hidden_size):
        w, b = _linear_params(keys[next(ki)], in_dim, 512)
        s, t = _bn_scale_shift(keys[next(ki)], 512)
        hidden.append((w, b, s, t))
        in_dim = 512
    params["hidden"] = hidden

    inter = []
    for _ in range(intermediate_layer):
        w, b = _linear_params(keys[next(ki)], in_dim, 256)
        s, t = _bn_scale_shift(keys[next(ki)], 256)
        inter.append((w, b, s, t))
        in_dim = 256
    params["intermediate"] = inter

    params["output_1"] = _linear_params(keys[next(ki)], in_dim, output_shape)
    return params


# ---------------------------------------------------------------------------
if __name__ == "__main__":
    key = jax.random.PRNGKey(0)
    kp, kx = jax.random.split(key)

    # Small, forward-consistent shapes.
    BATCH = 8
    INPUT_SHAPE = 32
    HIDDEN_SIZE = 2          # number of 512-wide hidden blocks
    INTERMEDIATE_LAYER = 1   # number of 256-wide blocks
    OUTPUT_SHAPE = 10

    # TODO(synk): Dropout and training-mode BatchNorm (batch statistics) are
    # not implemented; this is the eval-mode forward only.

    params = init_mlp_multitask_params(
        kp, INPUT_SHAPE, HIDDEN_SIZE, INTERMEDIATE_LAYER, OUTPUT_SHAPE)

    x = jax.random.normal(kx, (BATCH, INPUT_SHAPE), jnp.float32)

    out = jax.jit(mlp_multitask_forward)(params, x)
    out = jax.block_until_ready(out)
    assert out.shape == (BATCH, OUTPUT_SHAPE)

    ref = mlp_multitask_reference(params, x)
    assert bool(jnp.all(jnp.isfinite(out)))
    assert bool(jnp.allclose(out, ref, rtol=3e-2, atol=3e-2)), (
        float(jnp.max(jnp.abs(out - ref))))

    print("KERNEL_OK")
</pallas_src>

<mosaic_0001>
module attributes {stable_mosaic.version = 11 : i64} {
  func.func @_mlp_fused_kernel(%arg0: i32, %arg1: memref<16x128xbf16, #tpu.memory_space<vmem>>, %arg2: memref<128x512xbf16, #tpu.memory_space<vmem>>, %arg3: memref<1x512xf32, #tpu.memory_space<vmem>>, %arg4: memref<512x512xbf16, #tpu.memory_space<vmem>>, %arg5: memref<1x512xf32, #tpu.memory_space<vmem>>, %arg6: memref<512x256xbf16, #tpu.memory_space<vmem>>, %arg7: memref<1x256xf32, #tpu.memory_space<vmem>>, %arg8: memref<256x128xbf16, #tpu.memory_space<vmem>>, %arg9: memref<1x128xf32, #tpu.memory_space<vmem>>, %arg10: memref<16x128xf32, #tpu.memory_space<vmem>>) attributes {dimension_semantics = [#tpu.dimension_semantics<parallel>], iteration_bounds = array<i64: 1>, scalar_prefetch = 0 : i64, scratch_operands = 0 : i64, tpu.core_type = #tpu.core_type<tc>, window_params = [{transform_indices = @transform_0, window_bounds = array<i64: 16, 128>}, {pipeline_mode = #tpu.pipeline_mode<synchronous>, transform_indices = @transform_1, window_bounds = array<i64: 128, 512>}, {pipeline_mode = #tpu.pipeline_mode<synchronous>, transform_indices = @transform_2, window_bounds = array<i64: 1, 512>}, {pipeline_mode = #tpu.pipeline_mode<synchronous>, transform_indices = @transform_3, window_bounds = array<i64: 512, 512>}, {pipeline_mode = #tpu.pipeline_mode<synchronous>, transform_indices = @transform_4, window_bounds = array<i64: 1, 512>}, {pipeline_mode = #tpu.pipeline_mode<synchronous>, transform_indices = @transform_5, window_bounds = array<i64: 512, 256>}, {pipeline_mode = #tpu.pipeline_mode<synchronous>, transform_indices = @transform_6, window_bounds = array<i64: 1, 256>}, {pipeline_mode = #tpu.pipeline_mode<synchronous>, transform_indices = @transform_7, window_bounds = array<i64: 256, 128>}, {pipeline_mode = #tpu.pipeline_mode<synchronous>, transform_indices = @transform_8, window_bounds = array<i64: 1, 128>}, {transform_indices = @transform_9, window_bounds = array<i64: 16, 128>}]} {
    %c0 = arith.constant 0 : index
    %c0_0 = arith.constant 0 : index
    %0 = vector.load %arg1[%c0, %c0_0] : memref<16x128xbf16, #tpu.memory_space<vmem>>, vector<16x128xbf16>
    %c0_1 = arith.constant 0 : index
    %c0_2 = arith.constant 0 : index
    %1 = vector.load %arg2[%c0_1, %c0_2] : memref<128x512xbf16, #tpu.memory_space<vmem>>, vector<128x512xbf16>
    %cst = arith.constant dense<0.000000e+00> : vector<16x512xf32>
    %2 = tpu.matmul %0, %1, %cst {dimension_numbers = #tpu.dot_dimension_numbers<[1], [0], [0], [1], [0, 0, 1, 1], [], []>} : vector<16x128xbf16>, vector<128x512xbf16>, vector<16x512xf32> -> vector<16x512xf32>
    %c0_3 = arith.constant 0 : index
    %c0_4 = arith.constant 0 : index
    %3 = vector.load %arg3[%c0_3, %c0_4] : memref<1x512xf32, #tpu.memory_space<vmem>>, vector<1x512xf32>
    %4 = vector.broadcast %3 : vector<1x512xf32> to vector<16x512xf32>
    %5 = arith.addf %2, %4 : vector<16x512xf32>
    %cst_5 = arith.constant 0.000000e+00 : f32
    %6 = vector.broadcast %cst_5 : f32 to vector<16x512xf32>
    %7 = arith.maximumf %5, %6 : vector<16x512xf32>
    %8 = arith.truncf %7 : vector<16x512xf32> to vector<16x512xbf16>
    %c0_6 = arith.constant 0 : index
    %c0_7 = arith.constant 0 : index
    %9 = vector.load %arg4[%c0_6, %c0_7] : memref<512x512xbf16, #tpu.memory_space<vmem>>, vector<512x512xbf16>
    %cst_8 = arith.constant dense<0.000000e+00> : vector<16x512xf32>
    %10 = tpu.matmul %8, %9, %cst_8 {dimension_numbers = #tpu.dot_dimension_numbers<[1], [0], [0], [1], [0, 0, 1, 1], [], []>} : vector<16x512xbf16>, vector<512x512xbf16>, vector<16x512xf32> -> vector<16x512xf32>
    %c0_9 = arith.constant 0 : index
    %c0_10 = arith.constant 0 : index
    %11 = vector.load %arg5[%c0_9, %c0_10] : memref<1x512xf32, #tpu.memory_space<vmem>>, vector<1x512xf32>
    %12 = vector.broadcast %11 : vector<1x512xf32> to vector<16x512xf32>
    %13 = arith.addf %10, %12 : vector<16x512xf32>
    %cst_11 = arith.constant 0.000000e+00 : f32
    %14 = vector.broadcast %cst_11 : f32 to vector<16x512xf32>
    %15 = arith.maximumf %13, %14 : vector<16x512xf32>
    %16 = arith.truncf %15 : vector<16x512xf32> to vector<16x512xbf16>
    %c0_12 = arith.constant 0 : index
    %c0_13 = arith.constant 0 : index
    %17 = vector.load %arg6[%c0_12, %c0_13] : memref<512x256xbf16, #tpu.memory_space<vmem>>, vector<512x256xbf16>
    %cst_14 = arith.constant dense<0.000000e+00> : vector<16x256xf32>
    %18 = tpu.matmul %16, %17, %cst_14 {dimension_numbers = #tpu.dot_dimension_numbers<[1], [0], [0], [1], [0, 0, 1, 1], [], []>} : vector<16x512xbf16>, vector<512x256xbf16>, vector<16x256xf32> -> vector<16x256xf32>
    %c0_15 = arith.constant 0 : index
    %c0_16 = arith.constant 0 : index
    %19 = vector.load %arg7[%c0_15, %c0_16] : memref<1x256xf32, #tpu.memory_space<vmem>>, vector<1x256xf32>
    %20 = vector.broadcast %19 : vector<1x256xf32> to vector<16x256xf32>
    %21 = arith.addf %18, %20 : vector<16x256xf32>
    %cst_17 = arith.constant 0.000000e+00 : f32
    %22 = vector.broadcast %cst_17 : f32 to vector<16x256xf32>
    %23 = arith.maximumf %21, %22 : vector<16x256xf32>
    %24 = arith.truncf %23 : vector<16x256xf32> to vector<16x256xbf16>
    %c0_18 = arith.constant 0 : index
    %c0_19 = arith.constant 0 : index
    %25 = vector.load %arg8[%c0_18, %c0_19] : memref<256x128xbf16, #tpu.memory_space<vmem>>, vector<256x128xbf16>
    %cst_20 = arith.constant dense<0.000000e+00> : vector<16x128xf32>
    %26 = tpu.matmul %24, %25, %cst_20 {dimension_numbers = #tpu.dot_dimension_numbers<[1], [0], [0], [1], [0, 0, 1, 1], [], []>} : vector<16x256xbf16>, vector<256x128xbf16>, vector<16x128xf32> -> vector<16x128xf32>
    %c0_21 = arith.constant 0 : index
    %c0_22 = arith.constant 0 : index
    %27 = vector.load %arg9[%c0_21, %c0_22] : memref<1x128xf32, #tpu.memory_space<vmem>>, vector<1x128xf32>
    %28 = vector.broadcast %27 : vector<1x128xf32> to vector<16x128xf32>
    %29 = arith.addf %26, %28 : vector<16x128xf32>
    %c0_23 = arith.constant 0 : index
    %c0_24 = arith.constant 0 : index
    %30 = vector.load %arg10[%c0_23, %c0_24] : memref<16x128xf32, #tpu.memory_space<vmem>>, vector<16x128xf32>
    tpu.vector_store %arg10[%c0_23, %c0_24], %29 {strides = array<i32>} : memref<16x128xf32, #tpu.memory_space<vmem>>, vector<16x128xf32>,
    return
  }
  func.func @transform_0(%arg0: i32) -> (i32, i32) {
    %c0_i32 = arith.constant 0 : i32
    %c0_i32_0 = arith.constant 0 : i32
    return %arg0, %c0_i32 : i32, i32
  }
  func.func @transform_1(%arg0: i32) -> (i32, i32) {
    %c0_i32 = arith.constant 0 : i32
    %c0_i32_0 = arith.constant 0 : i32
    %c0_i32_1 = arith.constant 0 : i32
    return %c0_i32, %c0_i32_0 : i32, i32
  }
  func.func @transform_2(%arg0: i32) -> (i32, i32) {
    %c0_i32 = arith.constant 0 : i32
    %c0_i32_0 = arith.constant 0 : i32
    %c0_i32_1 = arith.constant 0 : i32
    return %c0_i32, %c0_i32_0 : i32, i32
  }
  func.func @transform_3(%arg0: i32) -> (i32, i32) {
    %c0_i32 = arith.constant 0 : i32
    %c0_i32_0 = arith.constant 0 : i32
    %c0_i32_1 = arith.constant 0 : i32
    return %c0_i32, %c0_i32_0 : i32, i32
  }
  func.func @transform_4(%arg0: i32) -> (i32, i32) {
    %c0_i32 = arith.constant 0 : i32
    %c0_i32_0 = arith.constant 0 : i32
    %c0_i32_1 = arith.constant 0 : i32
    return %c0_i32, %c0_i32_0 : i32, i32
  }
  func.func @transform_5(%arg0: i32) -> (i32, i32) {
    %c0_i32 = arith.constant 0 : i32
    %c0_i32_0 = arith.constant 0 : i32
    %c0_i32_1 = arith.constant 0 : i32
    return %c0_i32, %c0_i32_0 : i32, i32
  }
  func.func @transform_6(%arg0: i32) -> (i32, i32) {
    %c0_i32 = arith.constant 0 : i32
    %c0_i32_0 = arith.constant 0 : i32
    %c0_i32_1 = arith.constant 0 : i32
    return %c0_i32, %c0_i32_0 : i32, i32
  }
  func.func @transform_7(%arg0: i32) -> (i32, i32) {
    %c0_i32 = arith.constant 0 : i32
    %c0_i32_0 = arith.constant 0 : i32
    %c0_i32_1 = arith.constant 0 : i32
    return %c0_i32, %c0_i32_0 : i32, i32
  }
  func.func @transform_8(%arg0: i32) -> (i32, i32) {
    %c0_i32 = arith.constant 0 : i32
    %c0_i32_0 = arith.constant 0 : i32
    %c0_i32_1 = arith.constant 0 : i32
    return %c0_i32, %c0_i32_0 : i32, i32
  }
  func.func @transform_9(%arg0: i32) -> (i32, i32) {
    %c0_i32 = arith.constant 0 : i32
    %c0_i32_0 = arith.constant 0 : i32
    return %arg0, %c0_i32 : i32, i32
  }
}

</mosaic_0001>

<bundles_post_ra>
// kernel: mlp_multitask_forward.1
= control target key start
LH: loop header
LB: loop body
LE: loop exit
PB: predicated region body
PF: predicated region fallthrough
CT: control target
= control target key end

     0   :  { %s4697_s1 = inlined_call_operand.vmem [shape: bf16[128,512], index: 1, kind: input, shape index: {}]   ;;  %s4698_s3 = inlined_call_operand.vmem [shape: bf16[512,512], index: 3, kind: input, shape index: {}]   ;;  %s4699_s0 = inlined_call_operand.vmem [shape: bf16[16,128], index: 0, kind: input, shape index: {}]   ;;  %s4700_s2 = inlined_call_operand.vmem [shape: f32[1,512], index: 2, kind: input, shape index: {}]   ;;  %s4701_s5 = inlined_call_operand.vmem [shape: bf16[512,256], index: 5, kind: input, shape index: {}]   ;;  %s4702_s4 = inlined_call_operand.vmem [shape: f32[1,512], index: 4, kind: input, shape index: {}]   ;;  %s4703_s8 = inlined_call_operand.vmem [shape: f32[1,128], index: 8, kind: input, shape index: {}]   ;;  %s4704_s7 = inlined_call_operand.vmem [shape: bf16[256,128], index: 7, kind: input, shape index: {}]   ;;  %s4705_s6 = inlined_call_operand.vmem [shape: f32[1,256], index: 6, kind: input, shape index: {}]   ;;  %s4706_s9 = inlined_call_operand.vmem [shape: f32[16,128], index: 9, kind: output, shape index: {}]  }
   0x1   :  { %v2116_v0 = vld [vmem:[%s4697_s1 + $0xe0] sm:$0xf]  ;;  %v2993_v1 = vld [vmem:[%s4697_s1 + $0xec] sm:$0xf0]  ;;  %v2991_v2 = vld [vmem:[%s4697_s1 + $0xe4] sm:$0xf] }
   0x2   :  { %v2117_v3 = vor.u32 %v2993_v1, %v2116_v0  ;;  %v2118_v4 = vld [vmem:[%s4697_s1 + $0xf0] sm:$0xf0]  ;;  %v2124_v5 = vld [vmem:[%s4697_s1 + $0xe8] sm:$0xf]  ;;  %v2994_v6 = vld [vmem:[%s4697_s1 + $0xf4] sm:$0xf0] }
   0x3   :  { %v2121_v7 = vor.u32 %v2991_v2, %v2118_v4  ;;  %v2125_v8 = vor.u32 %v2994_v6, %v2124_v5  ;;  %v2992_v9 = vld [vmem:[%s4697_s1 + $0xec] sm:$0xf]  ;;  %v2126_v10 = vld [vmem:[%s4697_s1 + $0xf8] sm:$0xf0]  ;;  %v2100_v11 = vld [vmem:[%s4697_s1 + $0xc0] sm:$0xf] }
   0x4   :  { %242 = vmatpush.bf16.msra.mxu0 %v2117_v3  ;;  %v2129_v12 = vor.u32 %v2992_v9, %v2126_v10  ;;  %v2989_v13 = vld [vmem:[%s4697_s1 + $0xcc] sm:$0xf0]  ;;  %v2987_v14 = vld [vmem:[%s4697_s1 + $0xc4] sm:$0xf]  ;;  %v2102_v15 = vld [vmem:[%s4697_s1 + $0xd0] sm:$0xf0] }
   0x5   :  { %256 = vmatpush.bf16.msra.mxu1 %v2121_v7  ;;  %270 = vmatpush.bf16.msra.mxu2 %v2125_v8  ;;  %v2101_v16 = vor.u32 %v2989_v13, %v2100_v11  ;;  %v2105_v17 = vor.u32 %v2987_v14, %v2102_v15  ;;  %v2108_v18 = vld [vmem:[%s4697_s1 + $0xc8] sm:$0xf]  ;;  %v2990_v19 = vld [vmem:[%s4697_s1 + $0xd4] sm:$0xf0]  ;;  %v2988_v20 = vld [vmem:[%s4697_s1 + $0xcc] sm:$0xf] }
   0x6   :  { %284 = vmatpush.bf16.msra.mxu3 %v2129_v12  ;;  %v2109_v21 = vor.u32 %v2990_v19, %v2108_v18  ;;  %v2110_v22 = vld [vmem:[%s4697_s1 + $0xd8] sm:$0xf0]  ;;  %v2084_v23 = vld [vmem:[%s4697_s1 + $0xa0] sm:$0xf]  ;;  %v2985_v24 = vld [vmem:[%s4697_s1 + $0xac] sm:$0xf0] }
   0x7   :  { %v2113_v25 = vor.u32 %v2988_v20, %v2110_v22  ;;  %v2983_v26 = vld [vmem:[%s4697_s1 + $0xa4] sm:$0xf]  ;;  %v2086_v27 = vld [vmem:[%s4697_s1 + $0xb0] sm:$0xf0]  ;;  %v2092_v28 = vld [vmem:[%s4697_s1 + $0xa8] sm:$0xf]  ;;  %v2085_v29 = vor.u32 %v2985_v24, %v2084_v23 }
   0x8   :  { %243 = vmatpush.bf16.msra.mxu0 %v2101_v16  ;;  %v2986_v30 = vld [vmem:[%s4697_s1 + $0xb4] sm:$0xf0]  ;;  %v2984_v31 = vld [vmem:[%s4697_s1 + $0xac] sm:$0xf]  ;;  %v2094_v32 = vld [vmem:[%s4697_s1 + $0xb8] sm:$0xf0]  ;;  %v2089_v33 = vor.u32 %v2983_v26, %v2086_v27 }
   0x9   :  { %257 = vmatpush.bf16.msra.mxu1 %v2105_v17  ;;  %271 = vmatpush.bf16.msra.mxu2 %v2109_v21  ;;  %v2093_v34 = vor.u32 %v2986_v30, %v2092_v28  ;;  %v2068_v35 = vld [vmem:[%s4697_s1 + $0x80] sm:$0xf]  ;;  %v2981_v36 = vld [vmem:[%s4697_s1 + $0x8c] sm:$0xf0]  ;;  %v2979_v37 = vld [vmem:[%s4697_s1 + $0x84] sm:$0xf]  ;;  %v2097_v38 = vor.u32 %v2984_v31, %v2094_v32 }
   0xa   :  { %285 = vmatpush.bf16.msra.mxu3 %v2113_v25  ;;  %v2070_v39 = vld [vmem:[%s4697_s1 + $0x90] sm:$0xf0]  ;;  %v2076_v40 = vld [vmem:[%s4697_s1 + $0x88] sm:$0xf]  ;;  %v2982_v41 = vld [vmem:[%s4697_s1 + $0x94] sm:$0xf0]  ;;  %v2069_v44 = vor.u32 %v2981_v36, %v2068_v35 }
   0xb   :  { %v2980_v42 = vld [vmem:[%s4697_s1 + $0x8c] sm:$0xf]  ;;  %v2078_v43 = vld [vmem:[%s4697_s1 + $0x98] sm:$0xf0]  ;;  %v2073_v45 = vor.u32 %v2979_v37, %v2070_v39  ;;  %v2077_v46 = vor.u32 %v2982_v41, %v2076_v40  ;;  %v2052_v47 = vld [vmem:[%s4697_s1 + $0x60] sm:$0xf] }
   0xc   :  { %244 = vmatpush.bf16.msra.mxu0 %v2085_v29  ;;  %v2977_v48 = vld [vmem:[%s4697_s1 + $0x6c] sm:$0xf0]  ;;  %v2975_v49 = vld [vmem:[%s4697_s1 + $0x64] sm:$0xf]  ;;  %v2081_v50 = vor.u32 %v2980_v42, %v2078_v43  ;;  %v2054_v51 = vld [vmem:[%s4697_s1 + $0x70] sm:$0xf0] }
   0xd   :  { %258 = vmatpush.bf16.msra.mxu1 %v2089_v33  ;;  %272 = vmatpush.bf16.msra.mxu2 %v2093_v34  ;;  %v2060_v52 = vld [vmem:[%s4697_s1 + $0x68] sm:$0xf]  ;;  %v2978_v53 = vld [vmem:[%s4697_s1 + $0x74] sm:$0xf0]  ;;  %v2976_v54 = vld [vmem:[%s4697_s1 + $0x6c] sm:$0xf]  ;;  %v2053_v56 = vor.u32 %v2977_v48, %v2052_v47  ;;  %v2057_v57 = vor.u32 %v2975_v49, %v2054_v51 }
   0xe   :  { %286 = vmatpush.bf16.msra.mxu3 %v2097_v38  ;;  %v2062_v55 = vld [vmem:[%s4697_s1 + $0x78] sm:$0xf0]  ;;  %v2061_v58 = vor.u32 %v2978_v53, %v2060_v52  ;;  %v2036_v59 = vld [vmem:[%s4697_s1 + $0x40] sm:$0xf]  ;;  %v2973_v60 = vld [vmem:[%s4697_s1 + $0x4c] sm:$0xf0] }
   0xf   :  { %v2971_v61 = vld [vmem:[%s4697_s1 + $0x44] sm:$0xf]  ;;  %v2065_v62 = vor.u32 %v2976_v54, %v2062_v55  ;;  %v2038_v63 = vld [vmem:[%s4697_s1 + $0x50] sm:$0xf0]  ;;  %v2044_v0 = vld [vmem:[%s4697_s1 + $0x48] sm:$0xf]  ;;  %v2037_v4 = vor.u32 %v2973_v60, %v2036_v59 }
  0x10   :  { %245 = vmatpush.bf16.msra.mxu0 %v2069_v44  ;;  %v2974_v1 = vld [vmem:[%s4697_s1 + $0x54] sm:$0xf0]  ;;  %v2972_v2 = vld [vmem:[%s4697_s1 + $0x4c] sm:$0xf]  ;;  %v2046_v3 = vld [vmem:[%s4697_s1 + $0x58] sm:$0xf0]  ;;  %v2041_v5 = vor.u32 %v2971_v61, %v2038_v63 }
  0x11   :  { %259 = vmatpush.bf16.msra.mxu1 %v2073_v45  ;;  %273 = vmatpush.bf16.msra.mxu2 %v2077_v46  ;;  %v2045_v6 = vor.u32 %v2974_v1, %v2044_v0  ;;  %v2020_v7 = vld [vmem:[%s4697_s1 + $0x20] sm:$0xf]  ;;  %v2969_v8 = vld [vmem:[%s4697_s1 + $0x2c] sm:$0xf0]  ;;  %v2967_v9 = vld [vmem:[%s4697_s1 + $0x24] sm:$0xf]  ;;  %v2049_v10 = vor.u32 %v2972_v2, %v2046_v3 }
  0x12   :  { %287 = vmatpush.bf16.msra.mxu3 %v2081_v50  ;;  %v2022_v11 = vld [vmem:[%s4697_s1 + $0x30] sm:$0xf0]  ;;  %v2028_v12 = vld [vmem:[%s4697_s1 + $0x28] sm:$0xf]  ;;  %v2970_v13 = vld [vmem:[%s4697_s1 + $0x34] sm:$0xf0]  ;;  %v2021_v16 = vor.u32 %v2969_v8, %v2020_v7 }
  0x13   :  { %v2968_v14 = vld [vmem:[%s4697_s1 + $0x2c] sm:$0xf]  ;;  %v2030_v15 = vld [vmem:[%s4697_s1 + $0x38] sm:$0xf0]  ;;  %v2004_v17 = vld [vmem:[%s4697_s1] sm:$0xf]  ;;  %v2025_v18 = vor.u32 %v2967_v9, %v2022_v11  ;;  %v2029_v19 = vor.u32 %v2970_v13, %v2028_v12 }
  0x14   :  { %246 = vmatpush.bf16.msra.mxu0 %v2053_v56  ;;  %v2965_v20 = vld [vmem:[%s4697_s1 + $0xc] sm:$0xf0]  ;;  %v2963_v21 = vld [vmem:[%s4697_s1 + $0x4] sm:$0xf]  ;;  %v2006_v22 = vld [vmem:[%s4697_s1 + $0x10] sm:$0xf0]  ;;  %v2033_v23 = vor.u32 %v2968_v14, %v2030_v15 }
  0x15   :  { %260 = vmatpush.bf16.msra.mxu1 %v2057_v57  ;;  %274 = vmatpush.bf16.msra.mxu2 %v2061_v58  ;;  %v2012_v24 = vld [vmem:[%s4697_s1 + $0x8] sm:$0xf]  ;;  %v2966_v25 = vld [vmem:[%s4697_s1 + $0x14] sm:$0xf0]  ;;  %v2964_v26 = vld [vmem:[%s4697_s1 + $0xc] sm:$0xf]  ;;  %v2005_v30 = vor.u32 %v2965_v20, %v2004_v17  ;;  %v2009_v33 = vor.u32 %v2963_v21, %v2006_v22 }
  0x16   :  { %288 = vmatpush.bf16.msra.mxu3 %v2065_v62  ;;  %v2014_v27 = vld [vmem:[%s4697_s1 + $0x18] sm:$0xf0]  ;;  %v2244_v28 = vld [vmem:[%s4698_s3 + $0xe0] sm:$0xf]  ;;  %v3025_v29 = vld [vmem:[%s4698_s3 + $0xec] sm:$0xf0]  ;;  %v2013_v34 = vor.u32 %v2966_v25, %v2012_v24 }
  0x17   :  { %v2372_v31 = vld [vmem:[%s4698_s3 + $0x1e0] sm:$0xf]  ;;  %v3057_v32 = vld [vmem:[%s4698_s3 + $0x1ec] sm:$0xf0]  ;;  %v2017_v36 = vor.u32 %v2964_v26, %v2014_v27  ;;  %v2245_v37 = vor.u32 %v3025_v29, %v2244_v28 }
  0x18   :  { %247 = vmatpush.bf16.msra.mxu0 %v2037_v4  ;;  %v2962_v35 = vld [vmem:[%s4699_s0] sm:$0xff]  ;;  %v3089_v40 = vld [vmem:[%s4698_s3 + $0x2ec] sm:$0xf0]  ;;  %v2373_v41 = vor.u32 %v3057_v32, %v2372_v31 }
  0x19   :  { %261 = vmatpush.bf16.msra.mxu1 %v2041_v5  ;;  %275 = vmatpush.bf16.msra.mxu2 %v2045_v6  ;;  %v2228_v38 = vld [vmem:[%s4698_s3 + $0xc0] sm:$0xf]  ;;  %v3021_v42 = vld [vmem:[%s4698_s3 + $0xcc] sm:$0xf0] }
  0x1a   :  { %289 = vmatpush.bf16.msra.mxu3 %v2049_v10  ;;  %v2500_v39 = vld [vmem:[%s4698_s3 + $0x2e0] sm:$0xf]  ;;  %v3121_v44 = vld [vmem:[%s4698_s3 + $0x3ec] sm:$0xf0]  ;;  %v2229_v48 = vor.u32 %v3021_v42, %v2228_v38 }
  0x1b   :  { %v2628_v43 = vld [vmem:[%s4698_s3 + $0x3e0] sm:$0xf]  ;;  %v3053_v46 = vld [vmem:[%s4698_s3 + $0x1cc] sm:$0xf0]  ;;  %v2501_v47 = vor.u32 %v3089_v40, %v2500_v39 }
  0x1c   :  { %248 = vmatpush.bf16.msra.mxu0 %v2021_v16  ;;  %v2356_v45 = vld [vmem:[%s4698_s3 + $0x1c0] sm:$0xf]  ;;  %v2629_v49 = vor.u32 %v3121_v44, %v2628_v43  ;;  %v3085_v52 = vld [vmem:[%s4698_s3 + $0x2cc] sm:$0xf0] }
  0x1d   :  { %262 = vmatpush.bf16.msra.mxu1 %v2025_v18  ;;  %276 = vmatpush.bf16.msra.mxu2 %v2029_v19  ;;  %v2212_v50 = vld [vmem:[%s4698_s3 + $0xa0] sm:$0xf]  ;;  %v2357_v53 = vor.u32 %v3053_v46, %v2356_v45  ;;  %v3017_v54 = vld [vmem:[%s4698_s3 + $0xac] sm:$0xf0] }
  0x1e   :  { %290 = vmatpush.bf16.msra.mxu3 %v2033_v23  ;;  %v2484_v51 = vld [vmem:[%s4698_s3 + $0x2c0] sm:$0xf]  ;;  %v3117_v56 = vld [vmem:[%s4698_s3 + $0x3cc] sm:$0xf0]  ;;  %v2213_v60 = vor.u32 %v3017_v54, %v2212_v50 }
  0x1f   :  { %v2612_v55 = vld [vmem:[%s4698_s3 + $0x3c0] sm:$0xf]  ;;  %v3049_v58 = vld [vmem:[%s4698_s3 + $0x1ac] sm:$0xf0]  ;;  %v2485_v59 = vor.u32 %v3085_v52, %v2484_v51 }
  0x20   :  { %249 = vmatpush.bf16.msra.mxu0 %v2005_v30  ;;  %v2340_v57 = vld [vmem:[%s4698_s3 + $0x1a0] sm:$0xf]  ;;  %v2613_v61 = vor.u32 %v3117_v56, %v2612_v55  ;;  %v3081_v0 = vld [vmem:[%s4698_s3 + $0x2ac] sm:$0xf0]  ;;  %v3023_v55 = vld [vmem:[%s4698_s3 + $0xe4] sm:$0xf] }
  0x21   :  { %263 = vmatpush.bf16.msra.mxu1 %v2009_v33  ;;  %277 = vmatpush.bf16.msra.mxu2 %v2013_v34  ;;  %v2196_v62 = vld [vmem:[%s4698_s3 + $0x80] sm:$0xf]  ;;  %v2341_v1 = vor.u32 %v3049_v58, %v2340_v57  ;;  %v3013_v2 = vld [vmem:[%s4698_s3 + $0x8c] sm:$0xf0]  ;;  %v2246_v56 = vld [vmem:[%s4698_s3 + $0xf0] sm:$0xf0] }
  0x22   :  { %291 = vmatpush.bf16.msra.mxu3 %v2017_v36  ;;  %v2468_v63 = vld [vmem:[%s4698_s3 + $0x2a0] sm:$0xf]  ;;  %v3113_v4 = vld [vmem:[%s4698_s3 + $0x3ac] sm:$0xf0]  ;;  %v2197_v8 = vor.u32 %v3013_v2, %v2196_v62  ;;  %v3055_v57 = vld [vmem:[%s4698_s3 + $0x1e4] sm:$0xf] }
  0x23   :  { %250 = vmatmul.bf16.vlgmr.msra.gmra.mxu0 %v2962_v35  ;;  %v2596_v3 = vld [vmem:[%s4698_s3 + $0x3a0] sm:$0xf]  ;;  %v3045_v6 = vld [vmem:[%s4698_s3 + $0x18c] sm:$0xf0]  ;;  %v2469_v7 = vor.u32 %v3081_v0, %v2468_v63  ;;  %v2374_v58 = vld [vmem:[%s4698_s3 + $0x1f0] sm:$0xf0] }
  0x24   :  { %1088 = vmatpush.bf16.msrb.mxu0 %v2245_v37  ;;  %264 = vmatmul.bf16.vlgmr.msra.gmra.mxu1 %v2962_v35  ;;  %v2324_v5 = vld [vmem:[%s4698_s3 + $0x180] sm:$0xf]  ;;  %v2597_v9 = vor.u32 %v3113_v4, %v2596_v3  ;;  %v3077_v12 = vld [vmem:[%s4698_s3 + $0x28c] sm:$0xf0]  ;;  %v3019_v62 = vld [vmem:[%s4698_s3 + $0xc4] sm:$0xf]  ;;  %v2249_v3 = vor.u32 %v3023_v55, %v2246_v56 }
  0x25   :  { %1102 = vmatpush.bf16.msrb.mxu1 %v2373_v41  ;;  %278 = vmatmul.bf16.vlgmr.msra.gmra.mxu2 %v2962_v35  ;;  %v2180_v10 = vld [vmem:[%s4698_s3 + $0x60] sm:$0xf]  ;;  %v2325_v13 = vor.u32 %v3045_v6, %v2324_v5  ;;  %v3009_v14 = vld [vmem:[%s4698_s3 + $0x6c] sm:$0xf0]  ;;  %v3087_v5 = vld [vmem:[%s4698_s3 + $0x2e4] sm:$0xf] }
  0x26   :  { %292 = vmatmul.bf16.vlgmr.msra.gmra.mxu3 %v2962_v35  ;;  %1116 = vmatpush.bf16.msrb.mxu2 %v2501_v47  ;;  %v2452_v11 = vld [vmem:[%s4698_s3 + $0x280] sm:$0xf]  ;;  %v3109_v16 = vld [vmem:[%s4698_s3 + $0x38c] sm:$0xf0]  ;;  %v2181_v20 = vor.u32 %v3009_v14, %v2180_v10  ;;  %v2502_v6 = vld [vmem:[%s4698_s3 + $0x2f0] sm:$0xf0] }
  0x27   :  { %1130 = vmatpush.bf16.msrb.mxu3 %v2629_v49  ;;  %v2580_v15 = vld [vmem:[%s4698_s3 + $0x380] sm:$0xf]  ;;  %v3041_v18 = vld [vmem:[%s4698_s3 + $0x16c] sm:$0xf0]  ;;  %v2453_v19 = vor.u32 %v3077_v12, %v2452_v11  ;;  %v2630_v10 = vld [vmem:[%s4698_s3 + $0x3f0] sm:$0xf0] }
  0x28   :  { %1089 = vmatpush.bf16.msrb.mxu0 %v2229_v48  ;;  %v2308_v17 = vld [vmem:[%s4698_s3 + $0x160] sm:$0xf]  ;;  %v2581_v21 = vor.u32 %v3109_v16, %v2580_v15  ;;  %v3073_v24 = vld [vmem:[%s4698_s3 + $0x26c] sm:$0xf0]  ;;  %v3051_v11 = vld [vmem:[%s4698_s3 + $0x1c4] sm:$0xf]  ;;  %v2505_v15 = vor.u32 %v3087_v5, %v2502_v6 }
  0x29   :  { %1103 = vmatpush.bf16.msrb.mxu1 %v2357_v53  ;;  %v2164_v22 = vld [vmem:[%s4698_s3 + $0x40] sm:$0xf]  ;;  %v2309_v25 = vor.u32 %v3041_v18, %v2308_v17  ;;  %v3005_v26 = vld [vmem:[%s4698_s3 + $0x4c] sm:$0xf0]  ;;  %v2358_v12 = vld [vmem:[%s4698_s3 + $0x1d0] sm:$0xf0] }
  0x2a   :  { %1117 = vmatpush.bf16.msrb.mxu2 %v2485_v59  ;;  %v2436_v23 = vld [vmem:[%s4698_s3 + $0x260] sm:$0xf]  ;;  %v3105_v28 = vld [vmem:[%s4698_s3 + $0x36c] sm:$0xf0]  ;;  %v2165_v32 = vor.u32 %v3005_v26, %v2164_v22  ;;  %v3015_v18 = vld [vmem:[%s4698_s3 + $0xa4] sm:$0xf] }
  0x2b   :  { %1131 = vmatpush.bf16.msrb.mxu3 %v2613_v61  ;;  %v2564_v27 = vld [vmem:[%s4698_s3 + $0x360] sm:$0xf]  ;;  %v3037_v30 = vld [vmem:[%s4698_s3 + $0x14c] sm:$0xf0]  ;;  %v2437_v31 = vor.u32 %v3073_v24, %v2436_v23  ;;  %v2214_v22 = vld [vmem:[%s4698_s3 + $0xb0] sm:$0xf0] }
  0x2c   :  { %1090 = vmatpush.bf16.msrb.mxu0 %v2213_v60  ;;  %v2292_v29 = vld [vmem:[%s4698_s3 + $0x140] sm:$0xf]  ;;  %v2565_v33 = vor.u32 %v3105_v28, %v2564_v27  ;;  %v3069_v36 = vld [vmem:[%s4698_s3 + $0x24c] sm:$0xf0]  ;;  %v3115_v23 = vld [vmem:[%s4698_s3 + $0x3c4] sm:$0xf]  ;;  %v2217_v28 = vor.u32 %v3015_v18, %v2214_v22 }
  0x2d   :  { %1104 = vmatpush.bf16.msrb.mxu1 %v2341_v1  ;;  %v2148_v34 = vld [vmem:[%s4698_s3 + $0x20] sm:$0xf]  ;;  %v2293_v37 = vor.u32 %v3037_v30, %v2292_v29  ;;  %v3001_v38 = vld [vmem:[%s4698_s3 + $0x2c] sm:$0xf0]  ;;  %v2614_v24 = vld [vmem:[%s4698_s3 + $0x3d0] sm:$0xf0] }
  0x2e   :  { %1118 = vmatpush.bf16.msrb.mxu2 %v2469_v7  ;;  %v2420_v35 = vld [vmem:[%s4698_s3 + $0x240] sm:$0xf]  ;;  %v3101_v40 = vld [vmem:[%s4698_s3 + $0x34c] sm:$0xf0]  ;;  %v2149_v45 = vor.u32 %v3001_v38, %v2148_v34  ;;  %v2377_v7 = vor.u32 %v3055_v57, %v2374_v58  ;;  %v2342_v26 = vld [vmem:[%s4698_s3 + $0x1b0] sm:$0xf0]  ;;  %v2617_v29 = vor.u32 %v3115_v23, %v2614_v24 }
  0x2f   :  { %1132 = vmatpush.bf16.msrb.mxu3 %v2597_v9  ;;  %v2548_v39 = vld [vmem:[%s4698_s3 + $0x340] sm:$0xf]  ;;  %v3033_v42 = vld [vmem:[%s4698_s3 + $0x12c] sm:$0xf0]  ;;  %v2421_v43 = vor.u32 %v3069_v36, %v2420_v35  ;;  %v3119_v9 = vld [vmem:[%s4698_s3 + $0x3e4] sm:$0xf] }
  0x30   :  { %1091 = vmatpush.bf16.msrb.mxu0 %v2197_v8  ;;  %v2276_v41 = vld [vmem:[%s4698_s3 + $0x120] sm:$0xf]  ;;  %v2549_v46 = vor.u32 %v3101_v40, %v2548_v39  ;;  %v2997_v47 = vld [vmem:[%s4698_s3 + $0xc] sm:$0xf0]  ;;  %v2230_v8 = vld [vmem:[%s4698_s3 + $0xd0] sm:$0xf0]  ;;  %v2633_v17 = vor.u32 %v3119_v9, %v2630_v10 }
  0x31   :  { %1105 = vmatpush.bf16.msrb.mxu1 %v2325_v13  ;;  %v2132_v44 = vld [vmem:[%s4698_s3] sm:$0xf]  ;;  %v3065_v49 = vld [vmem:[%s4698_s3 + $0x22c] sm:$0xf0]  ;;  %v2277_v50 = vor.u32 %v3033_v42, %v2276_v41  ;;  %v2233_v16 = vor.u32 %v3019_v62, %v2230_v8  ;;  %v2326_v34 = vld [vmem:[%s4698_s3 + $0x190] sm:$0xf0] }
  0x32   :  { %1119 = vmatpush.bf16.msrb.mxu2 %v2453_v19  ;;  %v2404_v48 = vld [vmem:[%s4698_s3 + $0x220] sm:$0xf]  ;;  %v3097_v53 = vld [vmem:[%s4698_s3 + $0x32c] sm:$0xf0]  ;;  %v2133_v60 = vor.u32 %v2997_v47, %v2132_v44  ;;  %v3083_v19 = vld [vmem:[%s4698_s3 + $0x2c4] sm:$0xf] }
  0x33   :  { %1133 = vmatpush.bf16.msrb.mxu3 %v2581_v21  ;;  %v2260_v51 = vld [vmem:[%s4698_s3 + $0x100] sm:$0xf]  ;;  %v3029_v54 = vld [vmem:[%s4698_s3 + $0x10c] sm:$0xf0]  ;;  %v2405_v59 = vor.u32 %v3065_v49, %v2404_v48  ;;  %v2361_v21 = vor.u32 %v3051_v11, %v2358_v12  ;;  %v2470_v38 = vld [vmem:[%s4698_s3 + $0x2b0] sm:$0xf0] }
  0x34   :  { %1092 = vmatpush.bf16.msrb.mxu0 %v2181_v20  ;;  %v2532_v52 = vld [vmem:[%s4698_s3 + $0x320] sm:$0xf]  ;;  %v3061_v0 = vld [vmem:[%s4698_s3 + $0x20c] sm:$0xf0]  ;;  %v2261_v2 = vor.u32 %v3029_v54, %v2260_v51  ;;  %v2486_v20 = vld [vmem:[%s4698_s3 + $0x2d0] sm:$0xf0] }
  0x35   :  { %1106 = vmatpush.bf16.msrb.mxu1 %v2309_v25  ;;  %v2533_v61 = vor.u32 %v3097_v53, %v2532_v52  ;;  %v2388_v63 = vld [vmem:[%s4698_s3 + $0x200] sm:$0xf]  ;;  %v3093_v4 = vld [vmem:[%s4698_s3 + $0x30c] sm:$0xf0]  ;;  %v3047_v25 = vld [vmem:[%s4698_s3 + $0x1a4] sm:$0xf]  ;;  %v2489_v27 = vor.u32 %v3083_v19, %v2486_v20 }
  0x36   :  { %1120 = vmatpush.bf16.msrb.mxu2 %v2437_v31  ;;  %v2516_v1 = vld [vmem:[%s4698_s3 + $0x300] sm:$0xf]  ;;  %v2389_v13 = vor.u32 %v3061_v0, %v2388_v63  ;;  %v2345_v30 = vor.u32 %v3047_v25, %v2342_v26  ;;  %v3011_v31 = vld [vmem:[%s4698_s3 + $0x84] sm:$0xf]  ;;  %v2598_v41 = vld [vmem:[%s4698_s3 + $0x3b0] sm:$0xf0] }
  0x37   :  { %1134 = vmatpush.bf16.msrb.mxu3 %v2565_v33  ;;  %v2517_v14 = vor.u32 %v3093_v4, %v2516_v1  ;;  %v3043_v33 = vld [vmem:[%s4698_s3 + $0x184] sm:$0xf]  ;;  %v2182_v44 = vld [vmem:[%s4698_s3 + $0x70] sm:$0xf0] }
  0x38   :  { %1093 = vmatpush.bf16.msrb.mxu0 %v2165_v32  ;;  %v2198_v32 = vld [vmem:[%s4698_s3 + $0x90] sm:$0xf0]  ;;  %v2329_v36 = vor.u32 %v3043_v33, %v2326_v34  ;;  %v3111_v39 = vld [vmem:[%s4698_s3 + $0x3a4] sm:$0xf]  ;;  %v66_v33 = vld [vmem:[%s4700_s2] sm:$0xf] }
  0x39   :  { %1107 = vmatpush.bf16.msrb.mxu1 %v2293_v37  ;;  %v2201_v35 = vor.u32 %v3011_v31, %v2198_v32  ;;  %v3079_v37 = vld [vmem:[%s4698_s3 + $0x2a4] sm:$0xf]  ;;  %v2601_v42 = vor.u32 %v3111_v39, %v2598_v41  ;;  %v2310_v47 = vld [vmem:[%s4698_s3 + $0x170] sm:$0xf0] }
  0x3a   :  { %1121 = vmatpush.bf16.msrb.mxu2 %v2421_v43  ;;  %v2473_v40 = vor.u32 %v3079_v37, %v2470_v38  ;;  %v3007_v43 = vld [vmem:[%s4698_s3 + $0x64] sm:$0xf]  ;;  %v2582_v53 = vld [vmem:[%s4698_s3 + $0x390] sm:$0xf0]  ;;  %v69_v37 = vperm.slane %v66_v33, 1 }
  0x3b   :  { %1135 = vmatpush.bf16.msrb.mxu3 %v2549_v46  ;;  %v2185_v46 = vor.u32 %v3007_v43, %v2182_v44  ;;  %v3075_v49 = vld [vmem:[%s4698_s3 + $0x284] sm:$0xf]  ;;  %v2166_v56 = vld [vmem:[%s4698_s3 + $0x50] sm:$0xf0] }
  0x3c   :  { %1094 = vmatpush.bf16.msrb.mxu0 %v2149_v45  ;;  %v3039_v45 = vld [vmem:[%s4698_s3 + $0x164] sm:$0xf]  ;;  %v2438_v62 = vld [vmem:[%s4698_s3 + $0x270] sm:$0xf0] }
  0x3d   :  { %1108 = vmatpush.bf16.msrb.mxu1 %v2277_v50  ;;  %v2313_v48 = vor.u32 %v3039_v45, %v2310_v47  ;;  %v2454_v50 = vld [vmem:[%s4698_s3 + $0x290] sm:$0xf0]  ;;  %v3107_v52 = vld [vmem:[%s4698_s3 + $0x384] sm:$0xf]  ;;  %v3026_v47 = vld [vmem:[%s4698_s3 + $0xf4] sm:$0xf0] }
  0x3e   :  { %1122 = vmatpush.bf16.msrb.mxu2 %v2405_v59  ;;  %v2457_v51 = vor.u32 %v3075_v49, %v2454_v50  ;;  %v2585_v54 = vor.u32 %v3107_v52, %v2582_v53  ;;  %v3003_v55 = vld [vmem:[%s4698_s3 + $0x44] sm:$0xf]  ;;  %v2294_v59 = vld [vmem:[%s4698_s3 + $0x150] sm:$0xf0]  ;;  %v70_v49 = vperm.slane %v66_v33, 2  ;;  %v71_v53 = vperm.slane %v66_v33, 3 }
  0x3f   :  { %1136 = vmatpush.bf16.msrb.mxu3 %v2533_v61  ;;  %v3035_v57 = vld [vmem:[%s4698_s3 + $0x144] sm:$0xf]  ;;  %v2169_v58 = vor.u32 %v3003_v55, %v2166_v56  ;;  %v2566_v1 = vld [vmem:[%s4698_s3 + $0x370] sm:$0xf0]  ;;  %v3058_v52 = vld [vmem:[%s4698_s3 + $0x1f4] sm:$0xf0] }
  0x40   :  { %1095 = vmatpush.bf16.msrb.mxu0 %v2133_v60  ;;  %v2297_v60 = vor.u32 %v3035_v57, %v2294_v59  ;;  %v3071_v61 = vld [vmem:[%s4698_s3 + $0x264] sm:$0xf]  ;;  %v2150_v4 = vld [vmem:[%s4698_s3 + $0x30] sm:$0xf0]  ;;  %v2236_v59 = vld [vmem:[%s4698_s3 + $0xc8] sm:$0xf] }
  0x41   :  { %1109 = vmatpush.bf16.msrb.mxu1 %v2261_v2  ;;  %v3103_v63 = vld [vmem:[%s4698_s3 + $0x364] sm:$0xf]  ;;  %v2441_v0 = vor.u32 %v3071_v61, %v2438_v62  ;;  %v2422_v10 = vld [vmem:[%s4698_s3 + $0x250] sm:$0xf0] }
  0x42   :  { %1123 = vmatpush.bf16.msrb.mxu2 %v2389_v13  ;;  %v2569_v2 = vor.u32 %v3103_v63, %v2566_v1  ;;  %v3031_v6 = vld [vmem:[%s4698_s3 + $0x124] sm:$0xf]  ;;  %v2550_v13 = vld [vmem:[%s4698_s3 + $0x350] sm:$0xf0]  ;;  %v2364_v63 = vld [vmem:[%s4698_s3 + $0x1c8] sm:$0xf] }
  0x43   :  { %1137 = vmatpush.bf16.msrb.mxu3 %v2517_v14  ;;  %v3067_v9 = vld [vmem:[%s4698_s3 + $0x244] sm:$0xf]  ;;  %v2262_v19 = vld [vmem:[%s4698_s3 + $0x110] sm:$0xf0] }
  0x44   :  { %1144 = vmatpush.bf16.msra.mxu0 %v2249_v3  ;;  %v2999_v3 = vld [vmem:[%s4698_s3 + $0x24] sm:$0xf]  ;;  %v2425_v12 = vor.u32 %v3067_v9, %v2422_v10  ;;  %v2406_v22 = vld [vmem:[%s4698_s3 + $0x230] sm:$0xf0] }
  0x45   :  { %1158 = vmatpush.bf16.msra.mxu1 %v2377_v7  ;;  %v2153_v5 = vor.u32 %v2999_v3, %v2150_v4  ;;  %v2278_v7 = vld [vmem:[%s4698_s3 + $0x130] sm:$0xf0]  ;;  %v3099_v11 = vld [vmem:[%s4698_s3 + $0x344] sm:$0xf] }
  0x46   :  { %1172 = vmatpush.bf16.msra.mxu2 %v2505_v15  ;;  %v2281_v8 = vor.u32 %v3031_v6, %v2278_v7  ;;  %v2553_v14 = vor.u32 %v3099_v11, %v2550_v13  ;;  %v2995_v15 = vld [vmem:[%s4698_s3 + $0x4] sm:$0xf]  ;;  %v2534_v24 = vld [vmem:[%s4698_s3 + $0x330] sm:$0xf0]  ;;  %v2508_v6 = vld [vmem:[%s4698_s3 + $0x2e8] sm:$0xf] }
  0x47   :  { %1186 = vmatpush.bf16.msra.mxu3 %v2633_v17  ;;  %v3027_v17 = vld [vmem:[%s4698_s3 + $0x104] sm:$0xf]  ;;  %v2518_v31 = vld [vmem:[%s4698_s3 + $0x310] sm:$0xf0]  ;;  %v3090_v7 = vld [vmem:[%s4698_s3 + $0x2f4] sm:$0xf0] }
  0x48   :  { %1145 = vmatpush.bf16.msra.mxu0 %v2233_v16  ;;  %v2134_v16 = vld [vmem:[%s4698_s3 + $0x10] sm:$0xf0]  ;;  %v2265_v20 = vor.u32 %v3027_v17, %v2262_v19  ;;  %v3095_v23 = vld [vmem:[%s4698_s3 + $0x324] sm:$0xf]  ;;  %v3122_v11 = vld [vmem:[%s4698_s3 + $0x3f4] sm:$0xf0] }
  0x49   :  { %1159 = vmatpush.bf16.msra.mxu1 %v2361_v21  ;;  %v2137_v18 = vor.u32 %v2995_v15, %v2134_v16  ;;  %v3063_v21 = vld [vmem:[%s4698_s3 + $0x224] sm:$0xf]  ;;  %v2537_v26 = vor.u32 %v3095_v23, %v2534_v24  ;;  %v3018_v13 = vld [vmem:[%s4698_s3 + $0xb4] sm:$0xf0]  ;;  %v2348_v16 = vld [vmem:[%s4698_s3 + $0x1a8] sm:$0xf] }
  0x4a   :  { %1173 = vmatpush.bf16.msra.mxu2 %v2489_v27  ;;  %v2409_v25 = vor.u32 %v3063_v21, %v2406_v22  ;;  %v3059_v27 = vld [vmem:[%s4698_s3 + $0x204] sm:$0xf]  ;;  %v3050_v17 = vld [vmem:[%s4698_s3 + $0x1b4] sm:$0xf0]  ;;  %v2492_v24 = vld [vmem:[%s4698_s3 + $0x2c8] sm:$0xf] }
  0x4b   :  { %1187 = vmatpush.bf16.msra.mxu3 %v2617_v29 }
  0x4c   :  { %1146 = vmatpush.bf16.msra.mxu0 %v2217_v28  ;;  %v2390_v28 = vld [vmem:[%s4698_s3 + $0x210] sm:$0xf0] }
  0x4d   :  { %1160 = vmatpush.bf16.msra.mxu1 %v2345_v30  ;;  %v2393_v29 = vor.u32 %v3059_v27, %v2390_v28  ;;  %v3091_v30 = vld [vmem:[%s4698_s3 + $0x304] sm:$0xf]  ;;  %v2349_v28 = vor.u32 %v3050_v17, %v2348_v16  ;;  %v2140_v16 = vld [vmem:[%s4698_s3 + $0x8] sm:$0xf]  ;;  %v2998_v17 = vld [vmem:[%s4698_s3 + $0x14] sm:$0xf0] }
  0x4e   :  { %1174 = vmatpush.bf16.msra.mxu2 %v2473_v40  ;;  %v2521_v32 = vor.u32 %v3091_v30, %v2518_v31  ;;  %v2204_v30 = vld [vmem:[%s4698_s3 + $0x88] sm:$0xf]  ;;  %v3014_v31 = vld [vmem:[%s4698_s3 + $0x94] sm:$0xf0] }
  0x4f   :  { %1188 = vmatpush.bf16.msra.mxu3 %v2601_v42 }
  0x50   :  { %1147 = vmatpush.bf16.msra.mxu0 %v2201_v35  ;;  %v68_v35 = vperm.slane %v66_v33, 0  ;;  %v3046_v33 = vld [vmem:[%s4698_s3 + $0x194] sm:$0xf0] }
  0x51   :  { %1161 = vmatpush.bf16.msra.mxu1 %v2329_v36 }
  0x52   :  { %1175 = vmatpush.bf16.msra.mxu2 %v2457_v51  ;;  %v2380_v51 = vld [vmem:[%s4698_s3 + $0x1e8] sm:$0xf] }
  0x53   :  { %1189 = vmatpush.bf16.msra.mxu3 %v2585_v54 }
  0x54   :  { %1148 = vmatpush.bf16.msra.mxu0 %v2185_v46  ;;  %v2252_v46 = vld [vmem:[%s4698_s3 + $0xe8] sm:$0xf] }
  0x55   :  { %1162 = vmatpush.bf16.msra.mxu1 %v2313_v48  ;;  %v2253_v56 = vor.u32 %v3026_v47, %v2252_v46 }
  0x56   :  { %1176 = vmatpush.bf16.msra.mxu2 %v2441_v0  ;;  %v3054_v0 = vld [vmem:[%s4698_s3 + $0x1d4] sm:$0xf0] }
  0x57   :  { %1190 = vmatpush.bf16.msra.mxu3 %v2569_v2  ;;  %v2365_v10 = vor.u32 %v3054_v0, %v2364_v63  ;;  %v3074_v63 = vld [vmem:[%s4698_s3 + $0x274] sm:$0xf0] }
  0x58   :  { %1149 = vmatpush.bf16.msra.mxu0 %v2169_v58  ;;  %v2381_v58 = vor.u32 %v3058_v52, %v2380_v51  ;;  %v2588_v52 = vld [vmem:[%s4698_s3 + $0x388] sm:$0xf] }
  0x59   :  { %1163 = vmatpush.bf16.msra.mxu1 %v2297_v60  ;;  %v3022_v60 = vld [vmem:[%s4698_s3 + $0xd4] sm:$0xf0] }
  0x5a   :  { %1177 = vmatpush.bf16.msra.mxu2 %v2425_v12  ;;  %v2220_v12 = vld [vmem:[%s4698_s3 + $0xa8] sm:$0xf] }
  0x5b   :  { %1191 = vmatpush.bf16.msra.mxu3 %v2553_v14  ;;  %v2221_v23 = vor.u32 %v3018_v13, %v2220_v12  ;;  %v2556_v12 = vld [vmem:[%s4698_s3 + $0x348] sm:$0xf] }
  0x5c   :  { %1150 = vmatpush.bf16.msra.mxu0 %v2153_v5  ;;  %v2237_v5 = vor.u32 %v3022_v60, %v2236_v59 }
  0x5d   :  { %1164 = vmatpush.bf16.msra.mxu1 %v2281_v8  ;;  %v2636_v8 = vld [vmem:[%s4698_s3 + $0x3e8] sm:$0xf] }
  0x5e   :  { %1178 = vmatpush.bf16.msra.mxu2 %v2409_v25  ;;  %v2637_v22 = vor.u32 %v3122_v11, %v2636_v8  ;;  %v3086_v25 = vld [vmem:[%s4698_s3 + $0x2d4] sm:$0xf0] }
  0x5f   :  { %1192 = vmatpush.bf16.msra.mxu3 %v2537_v26  ;;  %v2620_v26 = vld [vmem:[%s4698_s3 + $0x3c8] sm:$0xf]  ;;  %v3070_v11 = vld [vmem:[%s4698_s3 + $0x254] sm:$0xf0] }
  0x60   :  { %1151 = vmatpush.bf16.msra.mxu0 %v2137_v18 }
  0x61   :  { %1165 = vmatpush.bf16.msra.mxu1 %v2265_v20  ;;  %v2509_v20 = vor.u32 %v3090_v7, %v2508_v6  ;;  %v2284_v6 = vld [vmem:[%s4698_s3 + $0x128] sm:$0xf]  ;;  %v3034_v7 = vld [vmem:[%s4698_s3 + $0x134] sm:$0xf0] }
  0x62   :  { %1179 = vmatpush.bf16.msra.mxu2 %v2393_v29  ;;  %v3118_v29 = vld [vmem:[%s4698_s3 + $0x3d4] sm:$0xf0] }
  0x63   :  { %1193 = vmatpush.bf16.msra.mxu3 %v2521_v32  ;;  %v2332_v32 = vld [vmem:[%s4698_s3 + $0x188] sm:$0xf] }
  0xa0   :  { %v251_v34 = vpop.f32.mrf.mxu0 }
  0xa1   :  { %v265_v36 = vpop.f32.mrf.mxu1  ;;  %v252_v38 = vadd.f32 %v251_v34, %v68_v35  ;;  %v2493_v34 = vor.u32 %v3086_v25, %v2492_v24  ;;  %v3056_v24 = vld [vmem:[%s4698_s3 + $0x1ec] sm:$0xf]  ;;  %v2382_v25 = vld [vmem:[%s4698_s3 + $0x1f8] sm:$0xf0] }
  0xa2   :  { %v266_v39 = vadd.f32 %v265_v36, %v69_v37  ;;  %v2205_v36 = vor.u32 %v3014_v31, %v2204_v30  ;;  %v2141_v30 = vor.u32 %v2998_v17, %v2140_v16  ;;  %v3008_v16 = vld [vmem:[%s4698_s3 + $0x6c] sm:$0xf]  ;;  %v2190_v17 = vld [vmem:[%s4698_s3 + $0x78] sm:$0xf0] }
  0xa3   :  { %v298_v43 = vmax.f32 %v252_v38, 0.0  ;;  %v3082_v38 = vld [vmem:[%s4698_s3 + $0x2b4] sm:$0xf0] }
  0xa4   :  { %v299_v48 = vmax.f32 %v266_v39, 0.0  ;;  %v2333_v39 = vor.u32 %v3046_v33, %v2332_v32  ;;  %v2540_v32 = vld [vmem:[%s4698_s3 + $0x328] sm:$0xf]  ;;  %v3098_v33 = vld [vmem:[%s4698_s3 + $0x334] sm:$0xf0] }
  0xa8   :  { %v279_v40 = vpop.f32.mrf.mxu2  ;;  %v253_v42 = vpop.f32.mrf.mxu0 }
  0xa9   :  { %v293_v41 = vpop.f32.mrf.mxu3  ;;  %v254_v44 = vadd.f32 %v253_v42, %v68_v35  ;;  %v267_v45 = vpop.f32.mrf.mxu1  ;;  %v280_v61 = vadd.f32 %v279_v40, %v70_v49  ;;  %v2621_v35 = vor.u32 %v3118_v29, %v2620_v26  ;;  %v2604_v40 = vld [vmem:[%s4698_s3 + $0x3a8] sm:$0xf]  ;;  %v3066_v29 = vld [vmem:[%s4698_s3 + $0x234] sm:$0xf0] }
  0xaa   :  { %v268_v50 = vadd.f32 %v267_v45, %v69_v37  ;;  %v294_v1 = vadd.f32 %v293_v41, %v71_v53  ;;  %v2476_v37 = vld [vmem:[%s4698_s3 + $0x2a8] sm:$0xf]  ;;  %v3114_v41 = vld [vmem:[%s4698_s3 + $0x3b4] sm:$0xf0] }
  0xab   :  { %v302_v54 = vmax.f32 %v254_v44, 0.0  ;;  %v300_v14 = vmax.f32 %v280_v61, 0.0  ;;  %v2188_v42 = vld [vmem:[%s4698_s3 + $0x68] sm:$0xf]  ;;  %v3042_v45 = vld [vmem:[%s4698_s3 + $0x174] sm:$0xf0]  ;;  %v2477_v46 = vor.u32 %v3082_v38, %v2476_v37  ;;  %v2605_v47 = vor.u32 %v3114_v41, %v2604_v40 }
  0xac   :  { %v303_v55 = vmax.f32 %v268_v50, 0.0  ;;  %v301_v18 = vmax.f32 %v294_v1, 0.0  ;;  %v2316_v44 = vld [vmem:[%s4698_s3 + $0x168] sm:$0xf]  ;;  %v2238_v38 = vld [vmem:[%s4698_s3 + $0xd8] sm:$0xf0]  ;;  %v2541_v41 = vor.u32 %v3098_v33, %v2540_v32 }
  0xad   :  { %v3848_v57 = vpack.c.bf16 %v302_v54, %v298_v43  ;;  %v3010_v43 = vld [vmem:[%s4698_s3 + $0x74] sm:$0xf0]  ;;  %v2317_v51 = vor.u32 %v3042_v45, %v2316_v44  ;;  %v2172_v54 = vld [vmem:[%s4698_s3 + $0x48] sm:$0xf]  ;;  %v2366_v40 = vld [vmem:[%s4698_s3 + $0x1d8] sm:$0xf0] }
  0xae   :  { %v3856_v62 = vpack.c.bf16 %v303_v55, %v299_v48  ;;  %v2460_v48 = vld [vmem:[%s4698_s3 + $0x288] sm:$0xf]  ;;  %v2189_v50 = vor.u32 %v3010_v43, %v2188_v42  ;;  %v3006_v55 = vld [vmem:[%s4698_s3 + $0x54] sm:$0xf0]  ;;  %v3036_v32 = vld [vmem:[%s4698_s3 + $0x14c] sm:$0xf] }
  0xaf   :  { %1096 = vmatmul.bf16.vlgmr.msrb.gmra.mxu0 %v3848_v57  ;;  %v2444_v61 = vld [vmem:[%s4698_s3 + $0x268] sm:$0xf]  ;;  %v2173_v0 = vor.u32 %v3006_v55, %v2172_v54  ;;  %v3062_v43 = vld [vmem:[%s4698_s3 + $0x214] sm:$0xf0]  ;;  %v2222_v54 = vld [vmem:[%s4698_s3 + $0xb8] sm:$0xf0] }
  0xb0   :  { %v281_v2 = vpop.f32.mrf.mxu2  ;;  %1110 = vmatmul.bf16.vlgmr.msrb.gmra.mxu1 %v3856_v62  ;;  %1200 = vmatpush.bf16.msrb.mxu0 %v2253_v56  ;;  %v2300_v56 = vld [vmem:[%s4698_s3 + $0x148] sm:$0xf]  ;;  %v2445_v8 = vor.u32 %v3074_v63, %v2444_v61  ;;  %v3094_v45 = vld [vmem:[%s4698_s3 + $0x314] sm:$0xf0]  ;;  %v3048_v55 = vld [vmem:[%s4698_s3 + $0x1ac] sm:$0xf] }
  0xb1   :  { %v282_v3 = vadd.f32 %v281_v2, %v70_v49  ;;  %v295_v4 = vpop.f32.mrf.mxu3  ;;  %1214 = vmatpush.bf16.msrb.mxu1 %v2381_v58  ;;  %v3078_v49 = vld [vmem:[%s4698_s3 + $0x294] sm:$0xf0]  ;;  %v2572_v2 = vld [vmem:[%s4698_s3 + $0x368] sm:$0xf]  ;;  %v3084_v61 = vld [vmem:[%s4698_s3 + $0x2cc] sm:$0xf] }
  0xb2   :  { %v296_v9 = vadd.f32 %v295_v4, %v71_v53  ;;  %v3110_v53 = vld [vmem:[%s4698_s3 + $0x394] sm:$0xf0]  ;;  %v2461_v59 = vor.u32 %v3078_v49, %v2460_v48  ;;  %v2156_v4 = vld [vmem:[%s4698_s3 + $0x28] sm:$0xf]  ;;  %v2494_v63 = vld [vmem:[%s4698_s3 + $0x2d8] sm:$0xf0] }
  0xb3   :  { %v304_v15 = vmax.f32 %v282_v3, 0.0  ;;  %v3038_v58 = vld [vmem:[%s4698_s3 + $0x154] sm:$0xf0]  ;;  %v2589_v60 = vor.u32 %v3110_v53, %v2588_v52  ;;  %v2396_v42 = vld [vmem:[%s4698_s3 + $0x208] sm:$0xf] }
  0xb4   :  { %v305_v19 = vmax.f32 %v296_v9, 0.0  ;;  %1201 = vmatpush.bf16.msrb.mxu0 %v2237_v5  ;;  %v2301_v1 = vor.u32 %v3038_v58, %v2300_v56  ;;  %v3106_v3 = vld [vmem:[%s4698_s3 + $0x374] sm:$0xf0]  ;;  %v2524_v44 = vld [vmem:[%s4698_s3 + $0x308] sm:$0xf]  ;;  %v2397_v53 = vor.u32 %v3062_v43, %v2396_v42 }
  0xb5   :  { %v3890_v21 = vpack.c.bf16 %v304_v15, %v300_v14  ;;  %1215 = vmatpush.bf16.msrb.mxu1 %v2365_v10  ;;  %v3002_v5 = vld [vmem:[%s4698_s3 + $0x34] sm:$0xf0]  ;;  %v2573_v9 = vor.u32 %v3106_v3, %v2572_v2  ;;  %v2428_v10 = vld [vmem:[%s4698_s3 + $0x248] sm:$0xf]  ;;  %v2285_v14 = vor.u32 %v3034_v7, %v2284_v6  ;;  %v3016_v52 = vld [vmem:[%s4698_s3 + $0xac] sm:$0xf]  ;;  %v2525_v58 = vor.u32 %v3094_v45, %v2524_v44 }
  0xb6   :  { %v3901_v27 = vpack.c.bf16 %v305_v19, %v301_v18  ;;  %v2157_v13 = vor.u32 %v3002_v5, %v2156_v4  ;;  %v3102_v15 = vld [vmem:[%s4698_s3 + $0x354] sm:$0xf0]  ;;  %v2268_v18 = vld [vmem:[%s4698_s3 + $0x108] sm:$0xf]  ;;  %v2350_v56 = vld [vmem:[%s4698_s3 + $0x1b8] sm:$0xf0] }
  0xb7   :  { %1124 = vmatmul.bf16.vlgmr.msrb.gmra.mxu2 %v3890_v21  ;;  %v3030_v19 = vld [vmem:[%s4698_s3 + $0x114] sm:$0xf0]  ;;  %v2557_v26 = vor.u32 %v3102_v15, %v2556_v12  ;;  %v3116_v2 = vld [vmem:[%s4698_s3 + $0x3cc] sm:$0xf]  ;;  %v2622_v3 = vld [vmem:[%s4698_s3 + $0x3d8] sm:$0xf0] }
  0xb8   :  { %1138 = vmatmul.bf16.vlgmr.msrb.gmra.mxu3 %v3901_v27  ;;  %1228 = vmatpush.bf16.msrb.mxu2 %v2509_v20  ;;  %v3024_v20 = vld [vmem:[%s4698_s3 + $0xec] sm:$0xf]  ;;  %v2269_v31 = vor.u32 %v3030_v19, %v2268_v18  ;;  %v2206_v5 = vld [vmem:[%s4698_s3 + $0x98] sm:$0xf0] }
  0xb9   :  { %1242 = vmatpush.bf16.msrb.mxu3 %v2637_v22  ;;  %1202 = vmatpush.bf16.msrb.mxu0 %v2221_v23  ;;  %v2429_v22 = vor.u32 %v3070_v11, %v2428_v10  ;;  %v2254_v23 = vld [vmem:[%s4698_s3 + $0xf8] sm:$0xf0]  ;;  %v3012_v4 = vld [vmem:[%s4698_s3 + $0x8c] sm:$0xf] }
  0xba   :  { %1216 = vmatpush.bf16.msrb.mxu1 %v2349_v28  ;;  %v2412_v28 = vld [vmem:[%s4698_s3 + $0x228] sm:$0xf]  ;;  %v3044_v6 = vld [vmem:[%s4698_s3 + $0x18c] sm:$0xf]  ;;  %v2334_v7 = vld [vmem:[%s4698_s3 + $0x198] sm:$0xf0]  ;;  %v2209_v12 = vor.u32 %v3012_v4, %v2206_v5 }
  0xbb   :  { %v2413_v37 = vor.u32 %v3066_v29, %v2412_v28  ;;  %v3080_v10 = vld [vmem:[%s4698_s3 + $0x2ac] sm:$0xf]  ;;  %v2478_v11 = vld [vmem:[%s4698_s3 + $0x2b8] sm:$0xf0] }
  0xbc   :  { %1229 = vmatpush.bf16.msrb.mxu2 %v2493_v34  ;;  %v2257_v34 = vor.u32 %v3024_v20, %v2254_v23  ;;  %v2606_v15 = vld [vmem:[%s4698_s3 + $0x3b8] sm:$0xf0]  ;;  %v3040_v18 = vld [vmem:[%s4698_s3 + $0x16c] sm:$0xf]  ;;  %v2481_v20 = vor.u32 %v3080_v10, %v2478_v11 }
  0xbd   :  { %1243 = vmatpush.bf16.msrb.mxu3 %v2621_v35  ;;  %1203 = vmatpush.bf16.msrb.mxu0 %v2205_v36  ;;  %v2385_v35 = vor.u32 %v3056_v24, %v2382_v25  ;;  %v3020_v36 = vld [vmem:[%s4698_s3 + $0xcc] sm:$0xf]  ;;  %v2318_v19 = vld [vmem:[%s4698_s3 + $0x178] sm:$0xf0]  ;;  %v2193_v25 = vor.u32 %v3008_v16, %v2190_v17  ;;  %v2684_v17 = vld [vmem:[%s4701_s5 + $0x50] sm:$0xf] }
  0xbe   :  { %1217 = vmatpush.bf16.msrb.mxu1 %v2333_v39  ;;  %v3052_v39 = vld [vmem:[%s4698_s3 + $0x1cc] sm:$0xf]  ;;  %v2241_v48 = vor.u32 %v3020_v36, %v2238_v38  ;;  %v2462_v24 = vld [vmem:[%s4698_s3 + $0x298] sm:$0xf0] }
  0xbf   :  { %1152 = vmatmul.bf16.vlgmr.msra.gmra.mxu0 %v3848_v57  ;;  %v2369_v49 = vor.u32 %v3052_v39, %v2366_v40  ;;  %v3076_v23 = vld [vmem:[%s4698_s3 + $0x28c] sm:$0xf]  ;;  %v2590_v29 = vld [vmem:[%s4698_s3 + $0x398] sm:$0xf0] }
  0xc0   :  { %1230 = vmatpush.bf16.msrb.mxu2 %v2477_v46  ;;  %1166 = vmatmul.bf16.vlgmr.msra.gmra.mxu1 %v3856_v62  ;;  %v3088_v46 = vld [vmem:[%s4698_s3 + $0x2ec] sm:$0xf]  ;;  %v2302_v33 = vld [vmem:[%s4698_s3 + $0x158] sm:$0xf0] }
  0xc1   :  { %1244 = vmatpush.bf16.msrb.mxu3 %v2605_v47  ;;  %1204 = vmatpush.bf16.msrb.mxu0 %v2189_v50  ;;  %v2510_v47 = vld [vmem:[%s4698_s3 + $0x2f8] sm:$0xf0]  ;;  %v3120_v50 = vld [vmem:[%s4698_s3 + $0x3ec] sm:$0xf]  ;;  %v2305_v39 = vor.u32 %v3036_v32, %v2302_v33  ;;  %v3152_v32 = vld [vmem:[%s4701_s5 + $0xe4] sm:$0xf0] }
  0xc2   :  { %1218 = vmatpush.bf16.msrb.mxu1 %v2317_v51  ;;  %v2638_v51 = vld [vmem:[%s4698_s3 + $0x3f8] sm:$0xf0]  ;;  %v3108_v28 = vld [vmem:[%s4698_s3 + $0x38c] sm:$0xf] }
  0xc3   :  { %v3072_v36 = vld [vmem:[%s4698_s3 + $0x26c] sm:$0xf]  ;;  %v2158_v43 = vld [vmem:[%s4698_s3 + $0x38] sm:$0xf0] }
  0xc4   :  { %1231 = vmatpush.bf16.msrb.mxu2 %v2461_v59  ;;  %v2513_v59 = vor.u32 %v3088_v46, %v2510_v47  ;;  %v3104_v40 = vld [vmem:[%s4698_s3 + $0x36c] sm:$0xf]  ;;  %v2286_v45 = vld [vmem:[%s4698_s3 + $0x138] sm:$0xf0] }
  0xc5   :  { %1245 = vmatpush.bf16.msrb.mxu3 %v2589_v60  ;;  %1205 = vmatpush.bf16.msrb.mxu0 %v2173_v0  ;;  %v2641_v60 = vor.u32 %v3120_v50, %v2638_v51  ;;  %v2225_v0 = vor.u32 %v3016_v52, %v2222_v54  ;;  %v3000_v42 = vld [vmem:[%s4698_s3 + $0x2c] sm:$0xf]  ;;  %v2542_v5 = vld [vmem:[%s4698_s3 + $0x338] sm:$0xf0] }
  0xc6   :  { %1219 = vmatpush.bf16.msrb.mxu1 %v2301_v1  ;;  %v2353_v1 = vor.u32 %v3048_v55, %v2350_v56  ;;  %v3032_v44 = vld [vmem:[%s4698_s3 + $0x12c] sm:$0xf]  ;;  %v2161_v50 = vor.u32 %v3000_v42, %v2158_v43  ;;  %v2142_v55 = vld [vmem:[%s4698_s3 + $0x18] sm:$0xf0]  ;;  %v2740_v42 = vld [vmem:[%s4701_s5 + $0xc0] sm:$0xf] }
  0xc7   :  { %1180 = vmatmul.bf16.vlgmr.msra.gmra.mxu2 %v3890_v21  ;;  %v2289_v51 = vor.u32 %v3032_v44, %v2286_v45  ;;  %v3100_v52 = vld [vmem:[%s4698_s3 + $0x34c] sm:$0xf]  ;;  %v3148_v44 = vld [vmem:[%s4701_s5 + $0xc4] sm:$0xf0]  ;;  %v3137_v45 = vld [vmem:[%s4701_s5 + $0x74] sm:$0xf] }
  0xc8   :  { %1194 = vmatmul.bf16.vlgmr.msra.gmra.mxu3 %v3901_v27  ;;  %1232 = vmatpush.bf16.msrb.mxu2 %v2445_v8  ;;  %v2497_v8 = vor.u32 %v3084_v61, %v2494_v63  ;;  %v2996_v54 = vld [vmem:[%s4698_s3 + $0xc] sm:$0xf]  ;;  %v3138_v61 = vld [vmem:[%s4701_s5 + $0x74] sm:$0xf0] }
  0xc9   :  { %1246 = vmatpush.bf16.msrb.mxu3 %v2573_v9  ;;  %1206 = vmatpush.bf16.msrb.mxu0 %v2157_v13  ;;  %v2625_v9 = vor.u32 %v3116_v2, %v2622_v3  ;;  %v2337_v13 = vor.u32 %v3044_v6, %v2334_v7  ;;  %v3028_v56 = vld [vmem:[%s4698_s3 + $0x10c] sm:$0xf]  ;;  %v2145_v2 = vor.u32 %v2996_v54, %v2142_v55  ;;  %v3135_v54 = vld [vmem:[%s4701_s5 + $0x64] sm:$0xf] }
  0xca   :  { %1220 = vmatpush.bf16.msrb.mxu1 %v2285_v14  ;;  %v3112_v14 = vld [vmem:[%s4698_s3 + $0x3ac] sm:$0xf] }
  0xcb   :  { %v3096_v4 = vld [vmem:[%s4698_s3 + $0x32c] sm:$0xf] }
  0xcc   :  { %1233 = vmatpush.bf16.msrb.mxu2 %v2429_v22  ;;  %v2609_v22 = vor.u32 %v3112_v14, %v2606_v15  ;;  %v2545_v10 = vor.u32 %v3096_v4, %v2542_v5  ;;  %v3060_v11 = vld [vmem:[%s4698_s3 + $0x20c] sm:$0xf]  ;;  %v2526_v14 = vld [vmem:[%s4698_s3 + $0x318] sm:$0xf0]  ;;  %v2716_v5 = vld [vmem:[%s4701_s5 + $0x90] sm:$0xf] }
  0xcd   :  { %1247 = vmatpush.bf16.msrb.mxu3 %v2557_v26  ;;  %1207 = vmatpush.bf16.msrb.mxu0 %v2141_v30  ;;  %v2321_v26 = vor.u32 %v3040_v18, %v2318_v19  ;;  %v3004_v30 = vld [vmem:[%s4698_s3 + $0x4c] sm:$0xf]  ;;  %v3134_v18 = vld [vmem:[%s4701_s5 + $0x54] sm:$0xf0] }
  0xce   :  { %1221 = vmatpush.bf16.msrb.mxu1 %v2269_v31  ;;  %v2174_v31 = vld [vmem:[%s4698_s3 + $0x58] sm:$0xf0] }
  0xcf   :  { %v2177_v38 = vor.u32 %v3004_v30, %v2174_v31  ;;  %v2756_v30 = vld [vmem:[%s4701_s5 + $0xe0] sm:$0xf] }
  0xd0   :  { %1234 = vmatpush.bf16.msrb.mxu2 %v2413_v37  ;;  %1208 = vmatmul.bf16.vlgmr.msrb.gmra.mxu0 %v3848_v57  ;;  %v2446_v37 = vld [vmem:[%s4698_s3 + $0x278] sm:$0xf0]  ;;  %v2757_v33 = vor.u32 %v3152_v32, %v2756_v30  ;;  %v2662_v30 = vld [vmem:[%s4701_s5 + $0x28] sm:$0xf0]  ;;  %v3151_v32 = vld [vmem:[%s4701_s5 + $0xe4] sm:$0xf] }
  0xd1   :  { %1256 = vmatpush.bf16.msra.mxu0 %v2257_v34  ;;  %1248 = vmatpush.bf16.msrb.mxu3 %v2541_v41  ;;  %v2465_v34 = vor.u32 %v3076_v23, %v2462_v24  ;;  %v2574_v41 = vld [vmem:[%s4698_s3 + $0x378] sm:$0xf0]  ;;  %v2449_v46 = vor.u32 %v3072_v36, %v2446_v37  ;;  %v3132_v23 = vld [vmem:[%s4701_s5 + $0x44] sm:$0xf0]  ;;  %v2748_v36 = vld [vmem:[%s4701_s5 + $0xd0] sm:$0xf] }
  0xd2   :  { %1270 = vmatpush.bf16.msra.mxu1 %v2385_v35  ;;  %v2593_v35 = vor.u32 %v3108_v28, %v2590_v29  ;;  %v2577_v47 = vor.u32 %v3104_v40, %v2574_v41  ;;  %v3128_v29 = vld [vmem:[%s4701_s5 + $0x24] sm:$0xf0]  ;;  %v2644_v40 = vld [vmem:[%s4701_s5] sm:$0xf] }
  0xd3   :  { %1222 = vmatmul.bf16.vlgmr.msrb.gmra.mxu1 %v3856_v62  ;;  %v3124_v41 = vld [vmem:[%s4701_s5 + $0x4] sm:$0xf0] }
  0xd4   :  { %1235 = vmatpush.bf16.msrb.mxu2 %v2397_v53  ;;  %v2558_v53 = vld [vmem:[%s4698_s3 + $0x358] sm:$0xf0]  ;;  %v2645_v43 = vor.u32 %v3124_v41, %v2644_v40  ;;  %v3149_v41 = vld [vmem:[%s4701_s5 + $0xd4] sm:$0xf] }
  0xd5   :  { %1257 = vmatpush.bf16.msra.mxu0 %v2241_v48  ;;  %1249 = vmatpush.bf16.msrb.mxu3 %v2525_v58  ;;  %v3068_v48 = vld [vmem:[%s4698_s3 + $0x24c] sm:$0xf]  ;;  %v2270_v58 = vld [vmem:[%s4698_s3 + $0x118] sm:$0xf0]  ;;  %v2561_v63 = vor.u32 %v3100_v52, %v2558_v53  ;;  %v3170_v53 = vld [vmem:[%s4701_s5 + $0x174] sm:$0xf0] }
  0xd6   :  { %1271 = vmatpush.bf16.msra.mxu1 %v2369_v49  ;;  %v2430_v49 = vld [vmem:[%s4698_s3 + $0x258] sm:$0xf0]  ;;  %v2273_v3 = vor.u32 %v3028_v56, %v2270_v58  ;;  %v2694_v56 = vld [vmem:[%s4701_s5 + $0x68] sm:$0xf0] }
  0xd7   :  { %1236 = vmatmul.bf16.vlgmr.msrb.gmra.mxu2 %v3890_v21  ;;  %v2697_v58 = vor.u32 %v3135_v54, %v2694_v56  ;;  %v2654_v40 = vld [vmem:[%s4701_s5 + $0x18] sm:$0xf0]  ;;  %v2742_v54 = vld [vmem:[%s4701_s5 + $0xc8] sm:$0xf0] }
  0xd8   :  { %1284 = vmatpush.bf16.msra.mxu2 %v2513_v59  ;;  %1250 = vmatmul.bf16.vlgmr.msrb.gmra.mxu3 %v3901_v27  ;;  %v2433_v59 = vor.u32 %v3068_v48, %v2430_v49  ;;  %v2732_v49 = vld [vmem:[%s4701_s5 + $0xb0] sm:$0xf] }
  0xd9   :  { %1298 = vmatpush.bf16.msra.mxu3 %v2641_v60  ;;  %1258 = vmatpush.bf16.msra.mxu0 %v2225_v0  ;;  %v2700_v60 = vld [vmem:[%s4701_s5 + $0x70] sm:$0xf]  ;;  %v3064_v0 = vld [vmem:[%s4698_s3 + $0x22c] sm:$0xf] }
  0xda   :  { %1272 = vmatpush.bf16.msra.mxu1 %v2353_v1  ;;  %v2414_v1 = vld [vmem:[%s4698_s3 + $0x238] sm:$0xf0]  ;;  %v2701_v6 = vor.u32 %v3138_v61, %v2700_v60  ;;  %v3144_v60 = vld [vmem:[%s4701_s5 + $0xa4] sm:$0xf0]  ;;  %v2820_v61 = vld [vmem:[%s4701_s5 + $0x160] sm:$0xf] }
  0xdb   :  { %v2417_v7 = vor.u32 %v3064_v0, %v2414_v1  ;;  %v3168_v0 = vld [vmem:[%s4701_s5 + $0x164] sm:$0xf0]  ;;  %v3133_v1 = vld [vmem:[%s4701_s5 + $0x54] sm:$0xf] }
  0xdc   :  { %1285 = vmatpush.bf16.msra.mxu2 %v2497_v8  ;;  %v2692_v8 = vld [vmem:[%s4701_s5 + $0x60] sm:$0xf] }
  0xdd   :  { %1299 = vmatpush.bf16.msra.mxu3 %v2625_v9  ;;  %1259 = vmatpush.bf16.msra.mxu0 %v2209_v12  ;;  %v3136_v9 = vld [vmem:[%s4701_s5 + $0x64] sm:$0xf0]  ;;  %v2398_v12 = vld [vmem:[%s4698_s3 + $0x218] sm:$0xf0] }
  0xde   :  { %1273 = vmatpush.bf16.msra.mxu1 %v2337_v13  ;;  %v3092_v13 = vld [vmem:[%s4698_s3 + $0x30c] sm:$0xf]  ;;  %v2693_v15 = vor.u32 %v3136_v9, %v2692_v8  ;;  %v2401_v16 = vor.u32 %v3060_v11, %v2398_v12  ;;  %v3166_v9 = vld [vmem:[%s4701_s5 + $0x154] sm:$0xf0] }
  0xdf   :  { %v2529_v19 = vor.u32 %v3092_v13, %v2526_v14  ;;  %v2678_v11 = vld [vmem:[%s4701_s5 + $0x48] sm:$0xf0]  ;;  %v2708_v14 = vld [vmem:[%s4701_s5 + $0x80] sm:$0xf] }
  0xe0   :  { %1286 = vmatpush.bf16.msra.mxu2 %v2481_v20  ;;  %v2685_v20 = vor.u32 %v3134_v18, %v2684_v17  ;;  %v3164_v18 = vld [vmem:[%s4701_s5 + $0x144] sm:$0xf0] }
  0xe1   :  { %1300 = vmatpush.bf16.msra.mxu3 %v2609_v22  ;;  %1260 = vmatpush.bf16.msra.mxu0 %v2193_v25  ;;  %v2676_v22 = vld [vmem:[%s4701_s5 + $0x40] sm:$0xf]  ;;  %v2764_v25 = vld [vmem:[%s4701_s5 + $0xf0] sm:$0xf] }
  0xe2   :  { %1274 = vmatpush.bf16.msra.mxu1 %v2321_v26  ;;  %v2677_v24 = vor.u32 %v3132_v23, %v2676_v22 }
  0xe4   :  { %1287 = vmatpush.bf16.msra.mxu2 %v2465_v34  ;;  %v2652_v34 = vld [vmem:[%s4701_s5 + $0x10] sm:$0xf] }
  0xe5   :  { %1301 = vmatpush.bf16.msra.mxu3 %v2593_v35  ;;  %1261 = vmatpush.bf16.msra.mxu0 %v2177_v38  ;;  %v3126_v35 = vld [vmem:[%s4701_s5 + $0x14] sm:$0xf0] }
  0xe6   :  { %1275 = vmatpush.bf16.msra.mxu1 %v2305_v39  ;;  %v2653_v37 = vor.u32 %v3126_v35, %v2652_v34  ;;  %v3150_v38 = vld [vmem:[%s4701_s5 + $0xd4] sm:$0xf0]  ;;  %v4421_v35 = vld [vmem:[%s4702_s4] sm:$0xf] }
  0xe7   :  { %v2749_v39 = vor.u32 %v3150_v38, %v2748_v36  ;;  %v2788_v36 = vld [vmem:[%s4701_s5 + $0x120] sm:$0xf] }
  0xe8   :  { %1288 = vmatpush.bf16.msra.mxu2 %v2449_v46  ;;  %v2702_v46 = vld [vmem:[%s4701_s5 + $0x78] sm:$0xf0] }
  0xe9   :  { %1302 = vmatpush.bf16.msra.mxu3 %v2577_v47  ;;  %1262 = vmatpush.bf16.msra.mxu0 %v2161_v50  ;;  %v2741_v47 = vor.u32 %v3148_v44, %v2740_v42  ;;  %v2705_v48 = vor.u32 %v3137_v45, %v2702_v46  ;;  %v3146_v50 = vld [vmem:[%s4701_s5 + $0xb4] sm:$0xf0]  ;;  %v440_v44 = vperm.slane %v4421_v35, 0 }
  0xea   :  { %1276 = vmatpush.bf16.msra.mxu1 %v2289_v51  ;;  %v2828_v51 = vld [vmem:[%s4701_s5 + $0x170] sm:$0xf]  ;;  %v2733_v52 = vor.u32 %v3146_v50, %v2732_v49  ;;  %v3123_v50 = vld [vmem:[%s4701_s5 + $0x4] sm:$0xf] }
  0xeb   :  { %v2829_v55 = vor.u32 %v3170_v53, %v2828_v51  ;;  %v2646_v51 = vld [vmem:[%s4701_s5 + $0x8] sm:$0xf0] }
  0xec   :  { %1289 = vmatpush.bf16.msra.mxu2 %v2433_v59  ;;  %v2724_v59 = vld [vmem:[%s4701_s5 + $0xa0] sm:$0xf]  ;;  %v2649_v53 = vor.u32 %v3123_v50, %v2646_v51 }
  0xed   :  { %1303 = vmatpush.bf16.msra.mxu3 %v2561_v63  ;;  %1263 = vmatpush.bf16.msra.mxu0 %v2145_v2  ;;  %v2725_v63 = vor.u32 %v3144_v60, %v2724_v59  ;;  %v2686_v2 = vld [vmem:[%s4701_s5 + $0x58] sm:$0xf0]  ;;  %v2772_v60 = vld [vmem:[%s4701_s5 + $0x100] sm:$0xf] }
  0xee   :  { %1277 = vmatpush.bf16.msra.mxu1 %v2273_v3  ;;  %v2821_v3 = vor.u32 %v3168_v0, %v2820_v61  ;;  %v2689_v4 = vor.u32 %v3133_v1, %v2686_v2  ;;  %v3156_v61 = vld [vmem:[%s4701_s5 + $0x104] sm:$0xf0]  ;;  %v3186_v2 = vld [vmem:[%s4701_s5 + $0x1f4] sm:$0xf0] }
  0xef   :  { %v2773_v1 = vor.u32 %v3156_v61, %v2772_v60  ;;  %v2798_v60 = vld [vmem:[%s4701_s5 + $0x138] sm:$0xf0] }
  0xf0   :  { %1290 = vmatpush.bf16.msra.mxu2 %v2417_v7  ;;  %1264 = vmatmul.bf16.vlgmr.msra.gmra.mxu0 %v3848_v57  ;;  %v2668_v57 = vld [vmem:[%s4701_s5 + $0x30] sm:$0xf] }
  0xf1   :  { %1714 = vmatpush.bf16.msrb.mxu0 %v2701_v6  ;;  %1304 = vmatpush.bf16.msra.mxu3 %v2545_v10  ;;  %v3142_v6 = vld [vmem:[%s4701_s5 + $0x94] sm:$0xf0]  ;;  %v2812_v7 = vld [vmem:[%s4701_s5 + $0x150] sm:$0xf]  ;;  %v3131_v10 = vld [vmem:[%s4701_s5 + $0x44] sm:$0xf] }
  0xf2   :  { %1278 = vmatmul.bf16.vlgmr.msra.gmra.mxu1 %v3856_v62  ;;  %v3130_v62 = vld [vmem:[%s4701_s5 + $0x34] sm:$0xf0]  ;;  %v2717_v8 = vor.u32 %v3142_v6, %v2716_v5  ;;  %v2813_v12 = vor.u32 %v3166_v9, %v2812_v7  ;;  %v2681_v13 = vor.u32 %v3131_v10, %v2678_v11  ;;  %v3169_v7 = vld [vmem:[%s4701_s5 + $0x174] sm:$0xf] }
  0xf3   :  { %v2669_v26 = vor.u32 %v3130_v62, %v2668_v57  ;;  %v2766_v57 = vld [vmem:[%s4701_s5 + $0xf8] sm:$0xf0] }
  0xf4   :  { %1291 = vmatpush.bf16.msra.mxu2 %v2401_v16  ;;  %v2804_v16 = vld [vmem:[%s4701_s5 + $0x140] sm:$0xf] }
  0xf5   :  { %1715 = vmatpush.bf16.msrb.mxu0 %v2693_v15  ;;  %1305 = vmatpush.bf16.msra.mxu3 %v2529_v19  ;;  %v3140_v15 = vld [vmem:[%s4701_s5 + $0x84] sm:$0xf0]  ;;  %v3129_v19 = vld [vmem:[%s4701_s5 + $0x34] sm:$0xf]  ;;  %v2805_v22 = vor.u32 %v3164_v18, %v2804_v16  ;;  %v2726_v18 = vld [vmem:[%s4701_s5 + $0xa8] sm:$0xf0] }
  0xf6   :  { %v2709_v17 = vor.u32 %v3140_v15, %v2708_v14  ;;  %v3184_v14 = vld [vmem:[%s4701_s5 + $0x1e4] sm:$0xf0] }
  0xf7   :  { %1292 = vmatmul.bf16.vlgmr.msra.gmra.mxu2 %v3890_v21  ;;  %v3154_v21 = vld [vmem:[%s4701_s5 + $0xf4] sm:$0xf0] }
  0xf8   :  { %1306 = vmatmul.bf16.vlgmr.msra.gmra.mxu3 %v3901_v27  ;;  %v2765_v28 = vor.u32 %v3154_v21, %v2764_v25  ;;  %v2660_v27 = vld [vmem:[%s4701_s5 + $0x20] sm:$0xf]  ;;  %1742 = vmatpush.bf16.msrb.mxu2 %v2829_v55  ;;  %v3162_v21 = vld [vmem:[%s4701_s5 + $0x134] sm:$0xf0] }
  0xf9   :  { %1716 = vmatpush.bf16.msrb.mxu0 %v2685_v20  ;;  %v2661_v31 = vor.u32 %v3128_v29, %v2660_v27  ;;  %v2670_v20 = vld [vmem:[%s4701_s5 + $0x38] sm:$0xf0]  ;;  %v3127_v29 = vld [vmem:[%s4701_s5 + $0x24] sm:$0xf] }
  0xfa   :  { %1728 = vmatpush.bf16.msrb.mxu1 %v2765_v28  ;;  %v2673_v23 = vor.u32 %v3129_v19, %v2670_v20  ;;  %v3167_v20 = vld [vmem:[%s4701_s5 + $0x164] sm:$0xf] }
  0xfc   :  { %1743 = vmatpush.bf16.msrb.mxu2 %v2821_v3  ;;  %v3145_v3 = vld [vmem:[%s4701_s5 + $0xb4] sm:$0xf] }
  0xfd   :  { %1717 = vmatpush.bf16.msrb.mxu0 %v2677_v24  ;;  %v3153_v24 = vld [vmem:[%s4701_s5 + $0xf4] sm:$0xf] }
  0xfe   :  { %1729 = vmatpush.bf16.msrb.mxu1 %v2757_v33  ;;  %v2769_v25 = vor.u32 %v3153_v24, %v2766_v57  ;;  %v2758_v33 = vld [vmem:[%s4701_s5 + $0xe8] sm:$0xf0] }
  0xff   :  { %v2761_v34 = vor.u32 %v3151_v32, %v2758_v33  ;;  %v3165_v32 = vld [vmem:[%s4701_s5 + $0x154] sm:$0xf] }
 0x100   :  { %1744 = vmatpush.bf16.msrb.mxu2 %v2813_v12 }
 0x101   :  { %1718 = vmatpush.bf16.msrb.mxu0 %v2669_v26  ;;  %v2796_v26 = vld [vmem:[%s4701_s5 + $0x130] sm:$0xf] }
 0x102   :  { %1730 = vmatpush.bf16.msrb.mxu1 %v2749_v39  ;;  %v2797_v27 = vor.u32 %v3162_v21, %v2796_v26  ;;  %v3125_v39 = vld [vmem:[%s4701_s5 + $0x14] sm:$0xf] }
 0x103   :  { %v2657_v42 = vor.u32 %v3125_v39, %v2654_v40  ;;  %v2868_v40 = vld [vmem:[%s4701_s5 + $0x1c0] sm:$0xf] }
 0x104   :  { %1745 = vmatpush.bf16.msrb.mxu2 %v2805_v22  ;;  %v2822_v22 = vld [vmem:[%s4701_s5 + $0x168] sm:$0xf0] }
 0x105   :  { %1719 = vmatpush.bf16.msrb.mxu0 %v2661_v31  ;;  %v2665_v31 = vor.u32 %v3127_v29, %v2662_v30  ;;  %v2825_v24 = vor.u32 %v3167_v20, %v2822_v22  ;;  %v3141_v30 = vld [vmem:[%s4701_s5 + $0x94] sm:$0xf] }
 0x106   :  { %1731 = vmatpush.bf16.msrb.mxu1 %v2741_v47  ;;  %v2780_v47 = vld [vmem:[%s4701_s5 + $0x110] sm:$0xf] }
 0x108   :  { %1746 = vmatpush.bf16.msrb.mxu2 %v2797_v27 }
 0x109   :  { %1720 = vmatpush.bf16.msrb.mxu0 %v2653_v37  ;;  %v3160_v37 = vld [vmem:[%s4701_s5 + $0x124] sm:$0xf0] }
 0x10a   :  { %1732 = vmatpush.bf16.msrb.mxu1 %v2733_v52  ;;  %v2789_v38 = vor.u32 %v3160_v37, %v2788_v36  ;;  %v3147_v52 = vld [vmem:[%s4701_s5 + $0xc4] sm:$0xf]  ;;  %v441_v36 = vperm.slane %v4421_v35, 1 }
 0x10c   :  { %1747 = vmatpush.bf16.msrb.mxu2 %v2789_v38 }
 0x10d   :  { %1721 = vmatpush.bf16.msrb.mxu0 %v2645_v43  ;;  %v2750_v43 = vld [vmem:[%s4701_s5 + $0xd8] sm:$0xf0] }
 0x10e   :  { %1733 = vmatpush.bf16.msrb.mxu1 %v2725_v63  ;;  %v2753_v46 = vor.u32 %v3149_v41, %v2750_v43  ;;  %v2892_v63 = vld [vmem:[%s4701_s5 + $0x1f0] sm:$0xf]  ;;  %v3180_v41 = vld [vmem:[%s4701_s5 + $0x1c4] sm:$0xf0] }
 0x10f   :  { %v2893_v5 = vor.u32 %v3186_v2, %v2892_v63  ;;  %v2852_v2 = vld [vmem:[%s4701_s5 + $0x1a0] sm:$0xf] }
 0x111   :  { %1770 = vmatpush.bf16.msra.mxu0 %v2705_v48  ;;  %v3158_v48 = vld [vmem:[%s4701_s5 + $0x114] sm:$0xf0]  ;;  %1756 = vmatpush.bf16.msrb.mxu3 %v2893_v5 }
 0x112   :  { %1734 = vmatpush.bf16.msrb.mxu1 %v2717_v8  ;;  %v2781_v49 = vor.u32 %v3158_v48, %v2780_v47  ;;  %v2830_v8 = vld [vmem:[%s4701_s5 + $0x178] sm:$0xf0]  ;;  %v3163_v48 = vld [vmem:[%s4701_s5 + $0x144] sm:$0xf] }
 0x113   :  { %v2833_v12 = vor.u32 %v3169_v7, %v2830_v8  ;;  %v2790_v7 = vld [vmem:[%s4701_s5 + $0x128] sm:$0xf0] }
 0x114   :  { %1748 = vmatpush.bf16.msrb.mxu2 %v2781_v49  ;;  %v2806_v49 = vld [vmem:[%s4701_s5 + $0x148] sm:$0xf0] }
 0x115   :  { %1771 = vmatpush.bf16.msra.mxu0 %v2697_v58  ;;  %v2745_v58 = vor.u32 %v3147_v52, %v2742_v54  ;;  %v2809_v52 = vor.u32 %v3163_v48, %v2806_v49  ;;  %v2860_v54 = vld [vmem:[%s4701_s5 + $0x1b0] sm:$0xf] }
 0x116   :  { %1735 = vmatpush.bf16.msrb.mxu1 %v2709_v17  ;;  %v3143_v17 = vld [vmem:[%s4701_s5 + $0xa4] sm:$0xf] }
 0x117   :  { %v2729_v19 = vor.u32 %v3143_v17, %v2726_v18  ;;  %v3157_v18 = vld [vmem:[%s4701_s5 + $0x114] sm:$0xf] }
 0x118   :  { %1749 = vmatpush.bf16.msrb.mxu2 %v2773_v1 }
 0x119   :  { %1772 = vmatpush.bf16.msra.mxu0 %v2689_v4  ;;  %v2734_v4 = vld [vmem:[%s4701_s5 + $0xb8] sm:$0xf0] }
 0x11a   :  { %1784 = vmatpush.bf16.msra.mxu1 %v2769_v25  ;;  %v2737_v6 = vor.u32 %v3145_v3, %v2734_v4  ;;  %v3182_v25 = vld [vmem:[%s4701_s5 + $0x1d4] sm:$0xf0]  ;;  %v3176_v3 = vld [vmem:[%s4701_s5 + $0x1a4] sm:$0xf0]  ;;  %v3159_v4 = vld [vmem:[%s4701_s5 + $0x124] sm:$0xf] }
 0x11c   :  { %1798 = vmatpush.bf16.msra.mxu2 %v2833_v12  ;;  %v2844_v12 = vld [vmem:[%s4701_s5 + $0x190] sm:$0xf] }
 0x11d   :  { %1773 = vmatpush.bf16.msra.mxu0 %v2681_v13  ;;  %v2884_v13 = vld [vmem:[%s4701_s5 + $0x1e0] sm:$0xf] }
 0x11e   :  { %1785 = vmatpush.bf16.msra.mxu1 %v2761_v34  ;;  %v2885_v16 = vor.u32 %v3184_v14, %v2884_v13  ;;  %v2814_v34 = vld [vmem:[%s4701_s5 + $0x158] sm:$0xf0]  ;;  %v3174_v13 = vld [vmem:[%s4701_s5 + $0x194] sm:$0xf0] }
 0x11f   :  { %v2817_v38 = vor.u32 %v3165_v32, %v2814_v34  ;;  %v2845_v17 = vor.u32 %v3174_v13, %v2844_v12 }
 0x120   :  { %1757 = vmatpush.bf16.msrb.mxu3 %v2885_v16  ;;  %1799 = vmatpush.bf16.msra.mxu2 %v2825_v24  ;;  %v2836_v24 = vld [vmem:[%s4701_s5 + $0x180] sm:$0xf] }
 0x121   :  { %1774 = vmatpush.bf16.msra.mxu0 %v2673_v23 }
 0x122   :  { %1786 = vmatpush.bf16.msra.mxu1 %v2753_v46  ;;  %v2710_v46 = vld [vmem:[%s4701_s5 + $0x88] sm:$0xf0] }
 0x124   :  { %1800 = vmatpush.bf16.msra.mxu2 %v2817_v38 }
 0x125   :  { %1775 = vmatpush.bf16.msra.mxu0 %v2665_v31  ;;  %v2718_v31 = vld [vmem:[%s4701_s5 + $0x98] sm:$0xf0] }
 0x126   :  { %1787 = vmatpush.bf16.msra.mxu1 %v2745_v58  ;;  %v2721_v33 = vor.u32 %v3141_v30, %v2718_v31  ;;  %v3185_v30 = vld [vmem:[%s4701_s5 + $0x1f4] sm:$0xf]  ;;  %v2894_v31 = vld [vmem:[%s4701_s5 + $0x1f8] sm:$0xf0] }
 0x128   :  { %1801 = vmatpush.bf16.msra.mxu2 %v2809_v52  ;;  %v2870_v52 = vld [vmem:[%s4701_s5 + $0x1c8] sm:$0xf0] }
 0x129   :  { %1776 = vmatpush.bf16.msra.mxu0 %v2657_v42 }
 0x12a   :  { %1788 = vmatpush.bf16.msra.mxu1 %v2737_v6  ;;  %v2853_v6 = vor.u32 %v3176_v3, %v2852_v2  ;;  %v2854_v2 = vld [vmem:[%s4701_s5 + $0x1a8] sm:$0xf0] }
 0x12c   :  { %v1097_v62 = vpop.f32.mrf.mxu0 }
 0x12d   :  { %v1111_v28 = vpop.f32.mrf.mxu1  ;;  %v1098_v55 = vadd.f32 %v1097_v62, %v440_v44  ;;  %1777 = vmatpush.bf16.msra.mxu0 %v2649_v53  ;;  %v2876_v62 = vld [vmem:[%s4701_s5 + $0x1d0] sm:$0xf] }
 0x12e   :  { %1789 = vmatpush.bf16.msra.mxu1 %v2729_v19  ;;  %v2877_v29 = vor.u32 %v3182_v25, %v2876_v62  ;;  %v2782_v19 = vld [vmem:[%s4701_s5 + $0x118] sm:$0xf0] }
 0x12f   :  { %v1112_v9 = vadd.f32 %v1111_v28, %v1098_v55  ;;  %v3178_v55 = vld [vmem:[%s4701_s5 + $0x1b4] sm:$0xf0]  ;;  %v2785_v20 = vor.u32 %v3157_v18, %v2782_v19 }
 0x130   :  { %1758 = vmatpush.bf16.msrb.mxu3 %v2877_v29  ;;  %v2861_v58 = vor.u32 %v3178_v55, %v2860_v54 }
 0x132   :  { %1790 = vmatpush.bf16.msra.mxu1 %v2721_v33  ;;  %v2897_v33 = vor.u32 %v3185_v30, %v2894_v31  ;;  %v3192_v30 = vld [vmem:[%s4704_s7 + $0x28] sm:$0xff]  ;;  %v3191_v31 = vld [vmem:[%s4704_s7 + $0x20] sm:$0xff] }
 0x134   :  { %v1099_v45 = vpop.f32.mrf.mxu0 }
 0x135   :  { %v1113_v56 = vpop.f32.mrf.mxu1  ;;  %v1100_v10 = vadd.f32 %v1099_v45, %v440_v44  ;;  %v2869_v44 = vor.u32 %v3180_v41, %v2868_v40  ;;  %v3139_v45 = vld [vmem:[%s4701_s5 + $0x84] sm:$0xf]  ;;  %v2886_v40 = vld [vmem:[%s4701_s5 + $0x1e8] sm:$0xf0] }
 0x136   :  { %v2713_v47 = vor.u32 %v3139_v45, %v2710_v46  ;;  %v2878_v45 = vld [vmem:[%s4701_s5 + $0x1d8] sm:$0xf0] }
 0x137   :  { %v1114_v23 = vadd.f32 %v1113_v56, %v1100_v10  ;;  %1759 = vmatpush.bf16.msrb.mxu3 %v2869_v44  ;;  %v3181_v44 = vld [vmem:[%s4701_s5 + $0x1d4] sm:$0xf] }
 0x138   :  { %1791 = vmatpush.bf16.msra.mxu1 %v2713_v47  ;;  %v2881_v47 = vor.u32 %v3181_v44, %v2878_v45 }
 0x13a   :  { %v1125_v59 = vpop.f32.mrf.mxu2 }
 0x13b   :  { %v1139_v0 = vpop.f32.mrf.mxu3  ;;  %v1126_v15 = vadd.f32 %v1125_v59, %v1112_v9  ;;  %v3161_v59 = vld [vmem:[%s4701_s5 + $0x134] sm:$0xf]  ;;  %1760 = vmatpush.bf16.msrb.mxu3 %v2861_v58  ;;  %v2793_v9 = vor.u32 %v3159_v4, %v2790_v7  ;;  %v2846_v7 = vld [vmem:[%s4701_s5 + $0x198] sm:$0xf0] }
 0x13c   :  { %v1153_v11 = vpop.f32.mrf.mxu0  ;;  %v2801_v61 = vor.u32 %v3161_v59, %v2798_v60  ;;  %v3177_v59 = vld [vmem:[%s4701_s5 + $0x1b4] sm:$0xf]  ;;  %v2862_v60 = vld [vmem:[%s4701_s5 + $0x1b8] sm:$0xf0] }
 0x13d   :  { %v1140_v26 = vadd.f32 %v1139_v0, %v1126_v15  ;;  %v1167_v21 = vpop.f32.mrf.mxu1  ;;  %v1154_v50 = vadd.f32 %v1153_v11, %v441_v36 }
 0x13e   :  { %1802 = vmatpush.bf16.msra.mxu2 %v2801_v61 }
 0x13f   :  { %v1312_v42 = vmax.f32 %v1140_v26, 0.0  ;;  %v1168_v63 = vadd.f32 %v1167_v21, %v1154_v50  ;;  %1761 = vmatpush.bf16.msrb.mxu3 %v2853_v6  ;;  %v3173_v6 = vld [vmem:[%s4701_s5 + $0x194] sm:$0xf] }
 0x142   :  { %v1127_v57 = vpop.f32.mrf.mxu2  ;;  %1803 = vmatpush.bf16.msra.mxu2 %v2793_v9  ;;  %v3171_v9 = vld [vmem:[%s4701_s5 + $0x184] sm:$0xf] }
 0x143   :  { %v1128_v28 = vadd.f32 %v1127_v57, %v1114_v23  ;;  %v1141_v27 = vpop.f32.mrf.mxu3  ;;  %v442_v23 = vperm.slane %v4421_v35, 2  ;;  %1762 = vmatpush.bf16.msrb.mxu3 %v2845_v17  ;;  %v3172_v57 = vld [vmem:[%s4701_s5 + $0x184] sm:$0xf0] }
 0x144   :  { %v1155_v39 = vpop.f32.mrf.mxu0  ;;  %v2837_v21 = vor.u32 %v3172_v57, %v2836_v24 }
 0x145   :  { %v1142_v37 = vadd.f32 %v1141_v27, %v1128_v28  ;;  %v1156_v0 = vadd.f32 %v1155_v39, %v441_v36  ;;  %v1169_v1 = vpop.f32.mrf.mxu1  ;;  %v3155_v28 = vld [vmem:[%s4701_s5 + $0x104] sm:$0xf]  ;;  %v2774_v27 = vld [vmem:[%s4701_s5 + $0x108] sm:$0xf0] }
 0x146   :  { %1804 = vmatpush.bf16.msra.mxu2 %v2785_v20  ;;  %v2777_v29 = vor.u32 %v3155_v28, %v2774_v27  ;;  %v3183_v39 = vld [vmem:[%s4701_s5 + $0x1e4] sm:$0xf]  ;;  %v3194_v27 = vld [vmem:[%s4704_s7 + $0x38] sm:$0xff] }
 0x147   :  { %v1316_v43 = vmax.f32 %v1142_v37, 0.0  ;;  %v1170_v10 = vadd.f32 %v1169_v1, %v1156_v0  ;;  %1763 = vmatpush.bf16.msrb.mxu3 %v2837_v21  ;;  %v2889_v41 = vor.u32 %v3183_v39, %v2886_v40  ;;  %v2865_v0 = vor.u32 %v3177_v59, %v2862_v60  ;;  %v3175_v1 = vld [vmem:[%s4701_s5 + $0x1a4] sm:$0xf] }
 0x148   :  { %v2857_v4 = vor.u32 %v3175_v1, %v2854_v2  ;;  %v3187_v39 = vld [vmem:[%s4704_s7] sm:$0xff] }
 0x149   :  { %v1320_v51 = vpack.c.bf16 %v1316_v43, %v1312_v42  ;;  %v3199_v40 = vld [vmem:[%s4704_s7 + $0x60] sm:$0xff] }
 0x14a   :  { %v1181_v53 = vpop.f32.mrf.mxu2  ;;  %1805 = vmatpush.bf16.msra.mxu2 %v2777_v29  ;;  %v3193_v29 = vld [vmem:[%s4704_s7 + $0x30] sm:$0xff] }
 0x14b   :  { %v1195_v56 = vpop.f32.mrf.mxu3  ;;  %1722 = vmatmul.bf16.vlgmr.msrb.gmra.mxu0 %v1320_v51  ;;  %v1182_v5 = vadd.f32 %v1181_v53, %v1168_v63  ;;  %1812 = vmatpush.bf16.msra.mxu3 %v2897_v33  ;;  %v3202_v33 = vld [vmem:[%s4704_s7 + $0x78] sm:$0xff] }
 0x14c   :  { %1964 = vmatpush.bf16.msrb.mxu0 %v3194_v27 }
 0x14d   :  { %v1209_v8 = vpop.f32.mrf.mxu0  ;;  %v1196_v14 = vadd.f32 %v1195_v56, %v1182_v5 }
 0x14e   :  { %v1210_v34 = vadd.f32 %v1209_v8, %v442_v23  ;;  %v2849_v8 = vor.u32 %v3173_v6, %v2846_v7 }
 0x14f   :  { %v1313_v62 = vmax.f32 %v1196_v14, 0.0  ;;  %1813 = vmatpush.bf16.msra.mxu3 %v2889_v41  ;;  %v3198_v41 = vld [vmem:[%s4704_s7 + $0x58] sm:$0xff] }
 0x150   :  { %v1223_v25 = vpop.f32.mrf.mxu1  ;;  %1965 = vmatpush.bf16.msrb.mxu0 %v3193_v29 }
 0x151   :  { %v1224_v42 = vadd.f32 %v1223_v25, %v1210_v34  ;;  %v3189_v34 = vld [vmem:[%s4704_s7 + $0x10] sm:$0xff] }
 0x152   :  { %v1183_v11 = vpop.f32.mrf.mxu2 }
 0x153   :  { %v1184_v15 = vadd.f32 %v1183_v11, %v1170_v10  ;;  %v1197_v16 = vpop.f32.mrf.mxu3  ;;  %1814 = vmatpush.bf16.msra.mxu3 %v2881_v47  ;;  %v2838_v10 = vld [vmem:[%s4701_s5 + $0x188] sm:$0xf0]  ;;  %v443_v11 = vperm.slane %v4421_v35, 3  ;;  %v1388_v47 = vld [vmem:[%s4705_s6] sm:$0x3] }
 0x154   :  { %v2841_v13 = vor.u32 %v3171_v9, %v2838_v10  ;;  %1966 = vmatpush.bf16.msrb.mxu0 %v3192_v30  ;;  %v1391_v6 = vperm.slane %v1388_v47, 1 }
 0x155   :  { %v1198_v22 = vadd.f32 %v1197_v16, %v1184_v15  ;;  %v1211_v36 = vpop.f32.mrf.mxu0 }
 0x156   :  { %v1212_v43 = vadd.f32 %v1211_v36, %v442_v23  ;;  %v3201_v36 = vld [vmem:[%s4704_s7 + $0x70] sm:$0xff] }
 0x157   :  { %v1317_v26 = vmax.f32 %v1198_v22, 0.0 }
 0x158   :  { %v1225_v48 = vpop.f32.mrf.mxu1  ;;  %1967 = vmatpush.bf16.msrb.mxu0 %v3191_v31 }
 0x159   :  { %v1321_v32 = vpack.c.bf16 %v1317_v26, %v1313_v62  ;;  %v1226_v49 = vadd.f32 %v1225_v48, %v1212_v43  ;;  %v3197_v43 = vld [vmem:[%s4704_s7 + $0x50] sm:$0xff]  ;;  %v3195_v48 = vld [vmem:[%s4704_s7 + $0x40] sm:$0xff] }
 0x15a   :  { %v1237_v37 = vpop.f32.mrf.mxu2 }
 0x15b   :  { %v1251_v38 = vpop.f32.mrf.mxu3  ;;  %1736 = vmatmul.bf16.vlgmr.msrb.gmra.mxu1 %v1321_v32  ;;  %1778 = vmatmul.bf16.vlgmr.msra.gmra.mxu0 %v1320_v51  ;;  %v1238_v46 = vadd.f32 %v1237_v37, %v1224_v42  ;;  %v3179_v51 = vld [vmem:[%s4701_s5 + $0x1c4] sm:$0xf]  ;;  %v3188_v37 = vld [vmem:[%s4704_s7 + $0x8] sm:$0xff] }
 0x15c   :  { %v2873_v55 = vor.u32 %v3179_v51, %v2870_v52  ;;  %1978 = vmatpush.bf16.msrb.mxu1 %v3202_v33 }
 0x15d   :  { %v1252_v53 = vadd.f32 %v1251_v38, %v1238_v46  ;;  %v3200_v38 = vld [vmem:[%s4704_s7 + $0x68] sm:$0xff] }
 0x15e   :  { %1815 = vmatpush.bf16.msra.mxu3 %v2873_v55  ;;  %v3196_v46 = vld [vmem:[%s4704_s7 + $0x48] sm:$0xff] }
 0x15f   :  { %v1314_v61 = vmax.f32 %v1252_v53, 0.0 }
 0x160   :  { %1979 = vmatpush.bf16.msrb.mxu1 %v3201_v36 }
 0x162   :  { %v1239_v50 = vpop.f32.mrf.mxu2  ;;  %1816 = vmatpush.bf16.msra.mxu3 %v2865_v0 }
 0x163   :  { %v1240_v54 = vadd.f32 %v1239_v50, %v1226_v49  ;;  %v1253_v56 = vpop.f32.mrf.mxu3  ;;  %v1390_v50 = vperm.slane %v1388_v47, 0 }
 0x164   :  { %1980 = vmatpush.bf16.msrb.mxu1 %v3200_v38 }
 0x165   :  { %v1254_v58 = vadd.f32 %v1253_v56, %v1240_v54 }
 0x166   :  { %1817 = vmatpush.bf16.msra.mxu3 %v2857_v4 }
 0x167   :  { %v1318_v63 = vmax.f32 %v1254_v58, 0.0 }
 0x168   :  { %1981 = vmatpush.bf16.msrb.mxu1 %v3199_v40 }
 0x169   :  { %v1322_v3 = vpack.c.bf16 %v1318_v63, %v1314_v61 }
 0x16a   :  { %1818 = vmatpush.bf16.msra.mxu3 %v2849_v8 }
 0x16b   :  { %1792 = vmatmul.bf16.vlgmr.msra.gmra.mxu1 %v1321_v32  ;;  %1750 = vmatmul.bf16.vlgmr.msrb.gmra.mxu2 %v1322_v3  ;;  %v3190_v32 = vld [vmem:[%s4704_s7 + $0x18] sm:$0xff] }
 0x16c   :  { %1968 = vmatpush.bf16.msrb.mxu0 %v3190_v32  ;;  %1982 = vmatpush.bf16.msrb.mxu1 %v3198_v41 }
 0x16d   :  { %v1265_v5 = vpop.f32.mrf.mxu0 }
 0x16e   :  { %v1266_v14 = vadd.f32 %v1265_v5, %v443_v11  ;;  %1819 = vmatpush.bf16.msra.mxu3 %v2841_v13 }
 0x16f   :  { %v1279_v12 = vpop.f32.mrf.mxu1 }
 0x170   :  { %v1280_v18 = vadd.f32 %v1279_v12, %v1266_v14  ;;  %1969 = vmatpush.bf16.msrb.mxu0 %v3189_v34  ;;  %1983 = vmatpush.bf16.msrb.mxu1 %v3197_v43 }
 0x174   :  { %1970 = vmatpush.bf16.msrb.mxu0 %v3188_v37  ;;  %1984 = vmatpush.bf16.msrb.mxu1 %v3196_v46 }
 0x175   :  { %v1267_v15 = vpop.f32.mrf.mxu0 }
 0x176   :  { %v1268_v19 = vadd.f32 %v1267_v15, %v443_v11 }
 0x177   :  { %v1281_v22 = vpop.f32.mrf.mxu1 }
 0x178   :  { %v1282_v23 = vadd.f32 %v1281_v22, %v1268_v19  ;;  %1971 = vmatpush.bf16.msrb.mxu0 %v3187_v39  ;;  %1985 = vmatpush.bf16.msrb.mxu1 %v3195_v48 }
 0x17a   :  { %v1293_v16 = vpop.f32.mrf.mxu2 }
 0x17b   :  { %v1307_v17 = vpop.f32.mrf.mxu3  ;;  %v1294_v20 = vadd.f32 %v1293_v16, %v1280_v18  ;;  %1806 = vmatmul.bf16.vlgmr.msra.gmra.mxu2 %v1322_v3 }
 0x17d   :  { %v1308_v57 = vadd.f32 %v1307_v17, %v1294_v20 }
 0x17f   :  { %v1315_v35 = vmax.f32 %v1308_v57, 0.0 }
 0x182   :  { %v1295_v24 = vpop.f32.mrf.mxu2 }
 0x183   :  { %v1296_v62 = vadd.f32 %v1295_v24, %v1282_v23  ;;  %v1309_v25 = vpop.f32.mrf.mxu3 }
 0x185   :  { %v1310_v26 = vadd.f32 %v1309_v25, %v1296_v62  ;;  %v3203_v62 = vld [vmem:[%s4703_s8] ss:$0 sm:$0xff] }
 0x187   :  { %v1319_v21 = vmax.f32 %v1310_v26, 0.0 }
 0x189   :  { %v1323_v28 = vpack.c.bf16 %v1319_v21, %v1315_v35 }
 0x18b   :  { %1764 = vmatmul.bf16.vlgmr.msrb.gmra.mxu3 %v1323_v28 }
 0x19b   :  { %1820 = vmatmul.bf16.vlgmr.msra.gmra.mxu3 %v1323_v28 }
 0x1c8   :  { %v1723_v42 = vpop.f32.mrf.mxu0 }
 0x1c9   :  { %v1724_v54 = vadd.f32 %v1723_v42, %v1390_v50 }
 0x1d0   :  { %v1725_v49 = vpop.f32.mrf.mxu0 }
 0x1d1   :  { %v1726_v55 = vadd.f32 %v1725_v49, %v1390_v50 }
 0x1d8   :  { %v1737_v44 = vpop.f32.mrf.mxu1  ;;  %v1779_v60 = vpop.f32.mrf.mxu0 }
 0x1d9   :  { %v1738_v56 = vadd.f32 %v1737_v44, %v1724_v54  ;;  %v1780_v10 = vadd.f32 %v1779_v60, %v1391_v6 }
 0x1e0   :  { %v1739_v51 = vpop.f32.mrf.mxu1  ;;  %v1781_v8 = vpop.f32.mrf.mxu0 }
 0x1e1   :  { %v1740_v58 = vadd.f32 %v1739_v51, %v1726_v55  ;;  %v1782_v12 = vadd.f32 %v1781_v8, %v1391_v6 }
 0x1e8   :  { %v1793_v0 = vpop.f32.mrf.mxu1 }
 0x1e9   :  { %v1794_v13 = vadd.f32 %v1793_v0, %v1780_v10 }
 0x1ee   :  { %v1751_v45 = vpop.f32.mrf.mxu2 }
 0x1ef   :  { %v1752_v59 = vadd.f32 %v1751_v45, %v1738_v56 }
 0x1f0   :  { %v1795_v11 = vpop.f32.mrf.mxu1 }
 0x1f1   :  { %v1796_v15 = vadd.f32 %v1795_v11, %v1782_v12 }
 0x1f6   :  { %v1753_v52 = vpop.f32.mrf.mxu2 }
 0x1f7   :  { %v1754_v61 = vadd.f32 %v1753_v52, %v1740_v58 }
 0x1fe   :  { %v1807_v3 = vpop.f32.mrf.mxu2 }
 0x1ff   :  { %v1808_v16 = vadd.f32 %v1807_v3, %v1794_v13 }
 0x206   :  { %v1809_v14 = vpop.f32.mrf.mxu2 }
 0x207   :  { %v1810_v17 = vadd.f32 %v1809_v14, %v1796_v15 }
 0x20e   :  { %v1765_v53 = vpop.f32.mrf.mxu3 }
 0x20f   :  { %v1766_v63 = vadd.f32 %v1765_v53, %v1752_v59 }
 0x211   :  { %v1826_v4 = vmax.f32 %v1766_v63, 0.0 }
 0x216   :  { %v1767_v1 = vpop.f32.mrf.mxu3 }
 0x217   :  { %v1768_v2 = vadd.f32 %v1767_v1, %v1754_v61 }
 0x219   :  { %v1828_v5 = vmax.f32 %v1768_v2, 0.0 }
 0x21b   :  { %v1830_v7 = vpack.c.bf16 %v1828_v5, %v1826_v4 }
 0x21d   :  { %1972 = vmatmul.bf16.vlgmr.msrb.gmra.mxu0 %v1830_v7 }
 0x21e   :  { %v1821_v9 = vpop.f32.mrf.mxu3 }
 0x21f   :  { %v1822_v18 = vadd.f32 %v1821_v9, %v1808_v16 }
 0x221   :  { %v1827_v22 = vmax.f32 %v1822_v18, 0.0 }
 0x226   :  { %v1823_v19 = vpop.f32.mrf.mxu3 }
 0x227   :  { %v1824_v20 = vadd.f32 %v1823_v19, %v1810_v17 }
 0x229   :  { %v1829_v23 = vmax.f32 %v1824_v20, 0.0 }
 0x22b   :  { %v1831_v24 = vpack.c.bf16 %v1829_v23, %v1827_v22 }
 0x22d   :  { %1986 = vmatmul.bf16.vlgmr.msrb.gmra.mxu1 %v1831_v24 }
 0x29a   :  { %v1973_v57 = vpop.f32.mrf.mxu0 }
 0x29b   :  { %v1974_v25 = vadd.f32 %v3203_v62, %v1973_v57 }
 0x2a2   :  { %v1975_v21 = vpop.f32.mrf.mxu0 }
 0x2a3   :  { %v1976_v28 = vadd.f32 %v3203_v62, %v1975_v21 }
 0x2aa   :  { %v1987_v26 = vpop.f32.mrf.mxu1 }
 0x2ab   :  { %v1988_v35 = vadd.f32 %v1987_v26, %v1974_v25 }
 0x2ad   :  { %1992 = vst [vmem:[%s4706_s9] sm:$0xff] %v1988_v35 }
 0x2b2   :  { %v1989_v27 = vpop.f32.mrf.mxu1 }
 0x2b3   :  { %v1990_v29 = vadd.f32 %v1989_v27, %v1976_v28 }
 0x2b5   :  { %1993 = vst [vmem:[%s4706_s9 + $0x8] sm:$0xff] %v1990_v29 }

</bundles_post_ra>
